<compile_context>
chip_gen: v5e
topology: v5e:2x2
jax: 0.10.0
libtpu: 0.0.40
codegen_flags: <defaults>
</compile_context>

<pallas_src>
import jax
import jax.numpy as jnp
from jax.experimental import pallas as pl
from jax.experimental.pallas import tpu as pltpu


def lstm_wave_kernel(xaug_ref,   # ((T+1)*B, DinP)  x + indicator cols, incl. drain wave
                     wslab_ref,  # (DinP + 2H + H + 8, 8H) packed weights/biases
                     out_ref,    # (T, B, H)   lstm_out
                     y_ref):     # (T, Od)     sigmoid(linear(lstm_out[:, -1, :]))
    T, B, H = out_ref.shape
    Od = y_ref.shape[1]
    H2 = 2 * H
    DinP = xaug_ref.shape[1]

    # Static, 8-aligned row offsets into the packed weight slab.
    r_wcomb = DinP
    r_wl = DinP + H2
    r_bl = DinP + H2 + H

    wih0_aug = wslab_ref[0:DinP, :]                  # (DinP, 8H)  x-proj + bias rows
    wcomb = wslab_ref[r_wcomb:r_wcomb + H2, :]       # (2H, 8H)    fused recurrent weight

    # --- prologue: one matmul gives every wave's x-term + per-wave bias in the
    # interleaved 8H gate layout (wave-0 layer-1 cols and drain-wave layer-0 cols are 0).
    gx = jnp.dot(xaug_ref[...], wih0_aug,
                 preferred_element_type=jnp.float32)  # ((T+1)*B, 8H)

    # Carried wavefront state: hcat = [h0(w) | h1(w-1)], ccat = [c0(w) | c1(w-1)].
    hcat = jnp.zeros((B, H2), jnp.float32)
    ccat = jnp.zeros((B, H2), jnp.float32)
    hist = []

    # T+1 waves, fully unrolled (T is tiny and static): ONE MXU push per wave.
    for w in range(T + 1):
        gates = gx[w * B:(w + 1) * B, :] + jnp.dot(
            hcat, wcomb, preferred_element_type=jnp.float32)        # (B, 8H)
        # PyTorch gate order (i, f, g, o); each slice covers both layers ([l0 | l1]).
        i = jax.nn.sigmoid(gates[:, 0:H2])
        f = jax.nn.sigmoid(gates[:, H2:2 * H2])
        g = jnp.tanh(gates[:, 2 * H2:3 * H2])
        o = jax.nn.sigmoid(gates[:, 3 * H2:4 * H2])
        ccat = f * ccat + i * g
        hcat = o * jnp.tanh(ccat)
        if w >= 1:
            hist.append(hcat)   # after wave w: [h0(w) | h1(w-1)]

    # --- epilogue: single store of lstm_out; linear+sigmoid from in-register values.
    stacked = jnp.stack(hist, axis=0)                 # (T, B, 2H); waves 1..T
    h1_all = stacked[:, :, H:]                        # (T, B, H) = h1(0..T-1)
    out_ref[...] = h1_all.astype(out_ref.dtype)

    # feat = lstm_out[:, -1, :]  (last BATCH element across time -- faithful to the module)
    feat = h1_all[:, B - 1, :]                        # (T, H)
    wl = wslab_ref[r_wl:r_wl + H, :]                  # (H, 8H), cols >= Od are zero
    bl = wslab_ref[r_bl:r_bl + 1, :]                  # (1, 8H)
    y_full = jnp.dot(feat, wl, preferred_element_type=jnp.float32) + bl
    y_ref[...] = jax.nn.sigmoid(y_full[:, 0:Od]).astype(y_ref.dtype)


@jax.jit
def lstm_forward(x, params):
    """x: (T, B, Din) float32. Returns (y_pred (T, Od), lstm_out (T, B, H))."""
    T, B, Din = x.shape
    H = params["whh0"].shape[1]
    H4, H8 = 4 * H, 8 * H
    Od = params["wl"].shape[0]
    DinP = ((Din + 2 + 7) // 8) * 8          # augmented x width, padded to multiple of 8
    f32 = jnp.float32

    def interleave(l0, l1):
        # (rows, 4H) x 2 -> (rows, 8H) in [i0 i1 | f0 f1 | g0 g1 | o0 o1] block order.
        cols = []
        for k in range(4):
            cols.append(l0[:, k * H:(k + 1) * H])
            cols.append(l1[:, k * H:(k + 1) * H])
        return jnp.concatenate(cols, axis=1)

    b0 = (params["bih0"] + params["bhh0"])[None, :].astype(f32)     # (1, 4H)
    b1 = (params["bih1"] + params["bhh1"])[None, :].astype(f32)     # (1, 4H)
    z_din = jnp.zeros((Din, H4), f32)
    z_1 = jnp.zeros((1, H4), f32)
    z_h = jnp.zeros((H, H4), f32)

    # x-projection weight, augmented with bias rows (consumed via indicator columns of x).
    wih0_rows = interleave(params["wih0"].T.astype(f32), z_din)     # (Din, 8H)
    b0_row = interleave(b0, z_1)                                    # layer-0 bias row
    b1_row = interleave(z_1, b1)                                    # layer-1 bias row
    pad_rows = jnp.zeros((DinP - (Din + 2), H8), f32)
    wih0_aug = jnp.concatenate([wih0_rows, b0_row, b1_row, pad_rows], axis=0)  # (DinP, 8H)

    # Fused wavefront weight: rows 0:H multiply h0(w-1), rows H:2H multiply h1(w-2).
    wcomb = jnp.concatenate([
        interleave(params["whh0"].T.astype(f32), params["wih1"].T.astype(f32)),
        interleave(z_h, params["whh1"].T.astype(f32)),
    ], axis=0)                                                      # (2H, 8H)

    # Final linear layer, padded to the slab's 8H lane width.
    wl_pad = jnp.zeros((H, H8), f32).at[:, :Od].set(params["wl"].T.astype(f32))
    bl_pad = jnp.zeros((8, H8), f32).at[0, :Od].set(params["bl"].astype(f32))

    # One packed weight slab -> one input DMA (sections 8-row aligned).
    wslab = jnp.concatenate([wih0_aug, wcomb, wl_pad, bl_pad], axis=0)  # (DinP+3H+8, 8H)

    # Augmented x: per-wave rows with layer-active indicator columns + one drain wave.
    xw = jnp.zeros((T + 1, B, DinP), f32)
    xw = xw.at[:T, :, :Din].set(x.astype(f32))
    xw = xw.at[:T, :, Din].set(1.0)          # layer-0 gates active for waves 0..T-1
    xw = xw.at[1:, :, Din + 1].set(1.0)      # layer-1 gates active for waves 1..T
    x_aug = xw.reshape((T + 1) * B, DinP)

    vmem = pl.BlockSpec(memory_space=pltpu.MemorySpace.VMEM)
    lstm_out, y = pl.pallas_call(
        lstm_wave_kernel,
        out_shape=(
            jax.ShapeDtypeStruct((T, B, H), jnp.float32),
            jax.ShapeDtypeStruct((T, Od), jnp.float32),
        ),
        in_specs=[vmem, vmem],
        out_specs=(vmem, vmem),
    )(x_aug, wslab)
    return y, lstm_out


def lstm_reference(x, params):
    """Pure-JAX reference identical to the PyTorch module forward."""
    T, B, Din = x.shape
    H = params["whh0"].shape[1]

    def cell(x_in, h, c, wih, whh, bih, bhh):
        gates = x_in @ wih.T + bih + h @ whh.T + bhh
        i = jax.nn.sigmoid(gates[:, 0:H])
        f = jax.nn.sigmoid(gates[:, H:2 * H])
        g = jnp.tanh(gates[:, 2 * H:3 * H])
        o = jax.nn.sigmoid(gates[:, 3 * H:4 * H])
        c_new = f * c + i * g
        return o * jnp.tanh(c_new), c_new

    h0 = jnp.zeros((B, H)); c0 = jnp.zeros((B, H))
    h1 = jnp.zeros((B, H)); c1 = jnp.zeros((B, H))
    outs = []
    for t in range(T):
        h0, c0 = cell(x[t], h0, c0, params["wih0"], params["whh0"],
                      params["bih0"], params["bhh0"])
        h1, c1 = cell(h0, h1, c1, params["wih1"], params["whh1"],
                      params["bih1"], params["bhh1"])
        outs.append(h1)
    lstm_out = jnp.stack(outs, axis=0)                 # (T, B, H)
    feat = lstm_out[:, -1, :]                          # (T, H)  -- last batch element
    y = jax.nn.sigmoid(feat @ params["wl"].T + params["bl"])
    return y, lstm_out


def init_params(key, input_dim, hidden_dim, output_dim):
    k = 1.0 / jnp.sqrt(hidden_dim)
    names_shapes = [
        ("wih0", (4 * hidden_dim, input_dim)),
        ("whh0", (4 * hidden_dim, hidden_dim)),
        ("bih0", (4 * hidden_dim,)),
        ("bhh0", (4 * hidden_dim,)),
        ("wih1", (4 * hidden_dim, hidden_dim)),
        ("whh1", (4 * hidden_dim, hidden_dim)),
        ("bih1", (4 * hidden_dim,)),
        ("bhh1", (4 * hidden_dim,)),
        ("wl", (output_dim, hidden_dim)),
        ("bl", (output_dim,)),
    ]
    keys = jax.random.split(key, len(names_shapes))
    return {name: jax.random.uniform(kk, shape, jnp.float32, -k, k)
            for kk, (name, shape) in zip(keys, names_shapes)}


if __name__ == "__main__":
    T, B, Din, H, Od = 8, 2, 16, 32, 1

    key = jax.random.PRNGKey(0)
    kx, kp = jax.random.split(key)
    x = jax.random.normal(kx, (T, B, Din), jnp.float32)
    params = init_params(kp, Din, H, Od)

    y_pred, lstm_out = jax.block_until_ready(lstm_forward(x, params))

    # numerical check against pure-JAX reference of the PyTorch forward
    y_ref, lstm_out_ref = lstm_reference(x, params)
    assert y_pred.shape == (T, Od)
    assert lstm_out.shape == (T, B, H)
    assert jnp.allclose(lstm_out, lstm_out_ref, atol=1e-5, rtol=1e-5), (
        f"lstm_out mismatch: max abs err {jnp.max(jnp.abs(lstm_out - lstm_out_ref))}")
    assert jnp.allclose(y_pred, y_ref, atol=1e-5, rtol=1e-5), (
        f"y mismatch: max abs err {jnp.max(jnp.abs(y_pred - y_ref))}")

    print("KERNEL_OK")
</pallas_src>

<mosaic_0001>
module attributes {stable_mosaic.version = 11 : i64} {
  func.func @lstm_wave_kernel(%arg0: memref<18x24xf32, #tpu.memory_space<vmem>>, %arg1: memref<128x256xf32, #tpu.memory_space<vmem>>, %arg2: memref<8x2x32xf32, #tpu.memory_space<vmem>>, %arg3: memref<8x1xf32, #tpu.memory_space<vmem>>) attributes {dimension_semantics = [], scalar_prefetch = 0 : i64, scratch_operands = 0 : i64, tpu.core_type = #tpu.core_type<tc>} {
    %c0 = arith.constant 0 : index
    %c0_0 = arith.constant 0 : index
    %0 = vector.load %arg1[%c0, %c0_0] : memref<128x256xf32, #tpu.memory_space<vmem>>, vector<24x256xf32>
    %c24 = arith.constant 24 : index
    %c0_1 = arith.constant 0 : index
    %1 = vector.load %arg1[%c24, %c0_1] : memref<128x256xf32, #tpu.memory_space<vmem>>, vector<64x256xf32>
    %c0_2 = arith.constant 0 : index
    %c0_3 = arith.constant 0 : index
    %2 = vector.load %arg0[%c0_2, %c0_3] : memref<18x24xf32, #tpu.memory_space<vmem>>, vector<18x24xf32>
    %cst = arith.constant dense<0.000000e+00> : vector<18x256xf32>
    %3 = tpu.matmul %2, %0, %cst {dimension_numbers = #tpu.dot_dimension_numbers<[1], [0], [0], [1], [0, 0, 1, 1], [], []>} : vector<18x24xf32>, vector<24x256xf32>, vector<18x256xf32> -> vector<18x256xf32>
    %cst_4 = arith.constant 0.000000e+00 : f32
    %4 = vector.broadcast %cst_4 : f32 to vector<2x64xf32>
    %cst_5 = arith.constant 0.000000e+00 : f32
    %5 = vector.broadcast %cst_5 : f32 to vector<2x64xf32>
    %6 = vector.extract_strided_slice %3 {offsets = [0, 0], sizes = [2, 256], strides = [1, 1]} : vector<18x256xf32> to vector<2x256xf32>
    %cst_6 = arith.constant dense<0.000000e+00> : vector<2x256xf32>
    %7 = tpu.matmul %4, %1, %cst_6 {dimension_numbers = #tpu.dot_dimension_numbers<[1], [0], [0], [1], [0, 0, 1, 1], [], []>} : vector<2x64xf32>, vector<64x256xf32>, vector<2x256xf32> -> vector<2x256xf32>
    %8 = arith.addf %6, %7 : vector<2x256xf32>
    %9 = vector.extract_strided_slice %8 {offsets = [0, 0], sizes = [2, 64], strides = [1, 1]} : vector<2x256xf32> to vector<2x64xf32>
    %10 = arith.negf %9 : vector<2x64xf32>
    %11 = math.exp %10 : vector<2x64xf32>
    %cst_7 = arith.constant 1.000000e+00 : f32
    %12 = vector.broadcast %cst_7 : f32 to vector<2x64xf32>
    %13 = arith.addf %12, %11 : vector<2x64xf32>
    %14 = arith.divf %12, %13 : vector<2x64xf32>
    %15 = vector.extract_strided_slice %8 {offsets = [0, 64], sizes = [2, 64], strides = [1, 1]} : vector<2x256xf32> to vector<2x64xf32>
    %16 = arith.negf %15 : vector<2x64xf32>
    %17 = math.exp %16 : vector<2x64xf32>
    %cst_8 = arith.constant 1.000000e+00 : f32
    %18 = vector.broadcast %cst_8 : f32 to vector<2x64xf32>
    %19 = arith.addf %18, %17 : vector<2x64xf32>
    %20 = arith.divf %18, %19 : vector<2x64xf32>
    %21 = vector.extract_strided_slice %8 {offsets = [0, 128], sizes = [2, 64], strides = [1, 1]} : vector<2x256xf32> to vector<2x64xf32>
    %22 = math.tanh %21 : vector<2x64xf32>
    %23 = vector.extract_strided_slice %8 {offsets = [0, 192], sizes = [2, 64], strides = [1, 1]} : vector<2x256xf32> to vector<2x64xf32>
    %24 = arith.negf %23 : vector<2x64xf32>
    %25 = math.exp %24 : vector<2x64xf32>
    %cst_9 = arith.constant 1.000000e+00 : f32
    %26 = vector.broadcast %cst_9 : f32 to vector<2x64xf32>
    %27 = arith.addf %26, %25 : vector<2x64xf32>
    %28 = arith.divf %26, %27 : vector<2x64xf32>
    %29 = arith.mulf %20, %5 : vector<2x64xf32>
    %30 = arith.mulf %14, %22 : vector<2x64xf32>
    %31 = arith.addf %29, %30 : vector<2x64xf32>
    %32 = math.tanh %31 : vector<2x64xf32>
    %33 = arith.mulf %28, %32 : vector<2x64xf32>
    %34 = vector.extract_strided_slice %3 {offsets = [2, 0], sizes = [2, 256], strides = [1, 1]} : vector<18x256xf32> to vector<2x256xf32>
    %cst_10 = arith.constant dense<0.000000e+00> : vector<2x256xf32>
    %35 = tpu.matmul %33, %1, %cst_10 {dimension_numbers = #tpu.dot_dimension_numbers<[1], [0], [0], [1], [0, 0, 1, 1], [], []>} : vector<2x64xf32>, vector<64x256xf32>, vector<2x256xf32> -> vector<2x256xf32>
    %36 = arith.addf %34, %35 : vector<2x256xf32>
    %37 = vector.extract_strided_slice %36 {offsets = [0, 0], sizes = [2, 64], strides = [1, 1]} : vector<2x256xf32> to vector<2x64xf32>
    %38 = arith.negf %37 : vector<2x64xf32>
    %39 = math.exp %38 : vector<2x64xf32>
    %cst_11 = arith.constant 1.000000e+00 : f32
    %40 = vector.broadcast %cst_11 : f32 to vector<2x64xf32>
    %41 = arith.addf %40, %39 : vector<2x64xf32>
    %42 = arith.divf %40, %41 : vector<2x64xf32>
    %43 = vector.extract_strided_slice %36 {offsets = [0, 64], sizes = [2, 64], strides = [1, 1]} : vector<2x256xf32> to vector<2x64xf32>
    %44 = arith.negf %43 : vector<2x64xf32>
    %45 = math.exp %44 : vector<2x64xf32>
    %cst_12 = arith.constant 1.000000e+00 : f32
    %46 = vector.broadcast %cst_12 : f32 to vector<2x64xf32>
    %47 = arith.addf %46, %45 : vector<2x64xf32>
    %48 = arith.divf %46, %47 : vector<2x64xf32>
    %49 = vector.extract_strided_slice %36 {offsets = [0, 128], sizes = [2, 64], strides = [1, 1]} : vector<2x256xf32> to vector<2x64xf32>
    %50 = math.tanh %49 : vector<2x64xf32>
    %51 = vector.extract_strided_slice %36 {offsets = [0, 192], sizes = [2, 64], strides = [1, 1]} : vector<2x256xf32> to vector<2x64xf32>
    %52 = arith.negf %51 : vector<2x64xf32>
    %53 = math.exp %52 : vector<2x64xf32>
    %cst_13 = arith.constant 1.000000e+00 : f32
    %54 = vector.broadcast %cst_13 : f32 to vector<2x64xf32>
    %55 = arith.addf %54, %53 : vector<2x64xf32>
    %56 = arith.divf %54, %55 : vector<2x64xf32>
    %57 = arith.mulf %48, %31 : vector<2x64xf32>
    %58 = arith.mulf %42, %50 : vector<2x64xf32>
    %59 = arith.addf %57, %58 : vector<2x64xf32>
    %60 = math.tanh %59 : vector<2x64xf32>
    %61 = arith.mulf %56, %60 : vector<2x64xf32>
    %62 = vector.extract_strided_slice %3 {offsets = [4, 0], sizes = [2, 256], strides = [1, 1]} : vector<18x256xf32> to vector<2x256xf32>
    %cst_14 = arith.constant dense<0.000000e+00> : vector<2x256xf32>
    %63 = tpu.matmul %61, %1, %cst_14 {dimension_numbers = #tpu.dot_dimension_numbers<[1], [0], [0], [1], [0, 0, 1, 1], [], []>} : vector<2x64xf32>, vector<64x256xf32>, vector<2x256xf32> -> vector<2x256xf32>
    %64 = arith.addf %62, %63 : vector<2x256xf32>
    %65 = vector.extract_strided_slice %64 {offsets = [0, 0], sizes = [2, 64], strides = [1, 1]} : vector<2x256xf32> to vector<2x64xf32>
    %66 = arith.negf %65 : vector<2x64xf32>
    %67 = math.exp %66 : vector<2x64xf32>
    %cst_15 = arith.constant 1.000000e+00 : f32
    %68 = vector.broadcast %cst_15 : f32 to vector<2x64xf32>
    %69 = arith.addf %68, %67 : vector<2x64xf32>
    %70 = arith.divf %68, %69 : vector<2x64xf32>
    %71 = vector.extract_strided_slice %64 {offsets = [0, 64], sizes = [2, 64], strides = [1, 1]} : vector<2x256xf32> to vector<2x64xf32>
    %72 = arith.negf %71 : vector<2x64xf32>
    %73 = math.exp %72 : vector<2x64xf32>
    %cst_16 = arith.constant 1.000000e+00 : f32
    %74 = vector.broadcast %cst_16 : f32 to vector<2x64xf32>
    %75 = arith.addf %74, %73 : vector<2x64xf32>
    %76 = arith.divf %74, %75 : vector<2x64xf32>
    %77 = vector.extract_strided_slice %64 {offsets = [0, 128], sizes = [2, 64], strides = [1, 1]} : vector<2x256xf32> to vector<2x64xf32>
    %78 = math.tanh %77 : vector<2x64xf32>
    %79 = vector.extract_strided_slice %64 {offsets = [0, 192], sizes = [2, 64], strides = [1, 1]} : vector<2x256xf32> to vector<2x64xf32>
    %80 = arith.negf %79 : vector<2x64xf32>
    %81 = math.exp %80 : vector<2x64xf32>
    %cst_17 = arith.constant 1.000000e+00 : f32
    %82 = vector.broadcast %cst_17 : f32 to vector<2x64xf32>
    %83 = arith.addf %82, %81 : vector<2x64xf32>
    %84 = arith.divf %82, %83 : vector<2x64xf32>
    %85 = arith.mulf %76, %59 : vector<2x64xf32>
    %86 = arith.mulf %70, %78 : vector<2x64xf32>
    %87 = arith.addf %85, %86 : vector<2x64xf32>
    %88 = math.tanh %87 : vector<2x64xf32>
    %89 = arith.mulf %84, %88 : vector<2x64xf32>
    %90 = vector.extract_strided_slice %3 {offsets = [6, 0], sizes = [2, 256], strides = [1, 1]} : vector<18x256xf32> to vector<2x256xf32>
    %cst_18 = arith.constant dense<0.000000e+00> : vector<2x256xf32>
    %91 = tpu.matmul %89, %1, %cst_18 {dimension_numbers = #tpu.dot_dimension_numbers<[1], [0], [0], [1], [0, 0, 1, 1], [], []>} : vector<2x64xf32>, vector<64x256xf32>, vector<2x256xf32> -> vector<2x256xf32>
    %92 = arith.addf %90, %91 : vector<2x256xf32>
    %93 = vector.extract_strided_slice %92 {offsets = [0, 0], sizes = [2, 64], strides = [1, 1]} : vector<2x256xf32> to vector<2x64xf32>
    %94 = arith.negf %93 : vector<2x64xf32>
    %95 = math.exp %94 : vector<2x64xf32>
    %cst_19 = arith.constant 1.000000e+00 : f32
    %96 = vector.broadcast %cst_19 : f32 to vector<2x64xf32>
    %97 = arith.addf %96, %95 : vector<2x64xf32>
    %98 = arith.divf %96, %97 : vector<2x64xf32>
    %99 = vector.extract_strided_slice %92 {offsets = [0, 64], sizes = [2, 64], strides = [1, 1]} : vector<2x256xf32> to vector<2x64xf32>
    %100 = arith.negf %99 : vector<2x64xf32>
    %101 = math.exp %100 : vector<2x64xf32>
    %cst_20 = arith.constant 1.000000e+00 : f32
    %102 = vector.broadcast %cst_20 : f32 to vector<2x64xf32>
    %103 = arith.addf %102, %101 : vector<2x64xf32>
    %104 = arith.divf %102, %103 : vector<2x64xf32>
    %105 = vector.extract_strided_slice %92 {offsets = [0, 128], sizes = [2, 64], strides = [1, 1]} : vector<2x256xf32> to vector<2x64xf32>
    %106 = math.tanh %105 : vector<2x64xf32>
    %107 = vector.extract_strided_slice %92 {offsets = [0, 192], sizes = [2, 64], strides = [1, 1]} : vector<2x256xf32> to vector<2x64xf32>
    %108 = arith.negf %107 : vector<2x64xf32>
    %109 = math.exp %108 : vector<2x64xf32>
    %cst_21 = arith.constant 1.000000e+00 : f32
    %110 = vector.broadcast %cst_21 : f32 to vector<2x64xf32>
    %111 = arith.addf %110, %109 : vector<2x64xf32>
    %112 = arith.divf %110, %111 : vector<2x64xf32>
    %113 = arith.mulf %104, %87 : vector<2x64xf32>
    %114 = arith.mulf %98, %106 : vector<2x64xf32>
    %115 = arith.addf %113, %114 : vector<2x64xf32>
    %116 = math.tanh %115 : vector<2x64xf32>
    %117 = arith.mulf %112, %116 : vector<2x64xf32>
    %118 = vector.extract_strided_slice %3 {offsets = [8, 0], sizes = [2, 256], strides = [1, 1]} : vector<18x256xf32> to vector<2x256xf32>
    %cst_22 = arith.constant dense<0.000000e+00> : vector<2x256xf32>
    %119 = tpu.matmul %117, %1, %cst_22 {dimension_numbers = #tpu.dot_dimension_numbers<[1], [0], [0], [1], [0, 0, 1, 1], [], []>} : vector<2x64xf32>, vector<64x256xf32>, vector<2x256xf32> -> vector<2x256xf32>
    %120 = arith.addf %118, %119 : vector<2x256xf32>
    %121 = vector.extract_strided_slice %120 {offsets = [0, 0], sizes = [2, 64], strides = [1, 1]} : vector<2x256xf32> to vector<2x64xf32>
    %122 = arith.negf %121 : vector<2x64xf32>
    %123 = math.exp %122 : vector<2x64xf32>
    %cst_23 = arith.constant 1.000000e+00 : f32
    %124 = vector.broadcast %cst_23 : f32 to vector<2x64xf32>
    %125 = arith.addf %124, %123 : vector<2x64xf32>
    %126 = arith.divf %124, %125 : vector<2x64xf32>
    %127 = vector.extract_strided_slice %120 {offsets = [0, 64], sizes = [2, 64], strides = [1, 1]} : vector<2x256xf32> to vector<2x64xf32>
    %128 = arith.negf %127 : vector<2x64xf32>
    %129 = math.exp %128 : vector<2x64xf32>
    %cst_24 = arith.constant 1.000000e+00 : f32
    %130 = vector.broadcast %cst_24 : f32 to vector<2x64xf32>
    %131 = arith.addf %130, %129 : vector<2x64xf32>
    %132 = arith.divf %130, %131 : vector<2x64xf32>
    %133 = vector.extract_strided_slice %120 {offsets = [0, 128], sizes = [2, 64], strides = [1, 1]} : vector<2x256xf32> to vector<2x64xf32>
    %134 = math.tanh %133 : vector<2x64xf32>
    %135 = vector.extract_strided_slice %120 {offsets = [0, 192], sizes = [2, 64], strides = [1, 1]} : vector<2x256xf32> to vector<2x64xf32>
    %136 = arith.negf %135 : vector<2x64xf32>
    %137 = math.exp %136 : vector<2x64xf32>
    %cst_25 = arith.constant 1.000000e+00 : f32
    %138 = vector.broadcast %cst_25 : f32 to vector<2x64xf32>
    %139 = arith.addf %138, %137 : vector<2x64xf32>
    %140 = arith.divf %138, %139 : vector<2x64xf32>
    %141 = arith.mulf %132, %115 : vector<2x64xf32>
    %142 = arith.mulf %126, %134 : vector<2x64xf32>
    %143 = arith.addf %141, %142 : vector<2x64xf32>
    %144 = math.tanh %143 : vector<2x64xf32>
    %145 = arith.mulf %140, %144 : vector<2x64xf32>
    %146 = vector.extract_strided_slice %3 {offsets = [10, 0], sizes = [2, 256], strides = [1, 1]} : vector<18x256xf32> to vector<2x256xf32>
    %cst_26 = arith.constant dense<0.000000e+00> : vector<2x256xf32>
    %147 = tpu.matmul %145, %1, %cst_26 {dimension_numbers = #tpu.dot_dimension_numbers<[1], [0], [0], [1], [0, 0, 1, 1], [], []>} : vector<2x64xf32>, vector<64x256xf32>, vector<2x256xf32> -> vector<2x256xf32>
    %148 = arith.addf %146, %147 : vector<2x256xf32>
    %149 = vector.extract_strided_slice %148 {offsets = [0, 0], sizes = [2, 64], strides = [1, 1]} : vector<2x256xf32> to vector<2x64xf32>
    %150 = arith.negf %149 : vector<2x64xf32>
    %151 = math.exp %150 : vector<2x64xf32>
    %cst_27 = arith.constant 1.000000e+00 : f32
    %152 = vector.broadcast %cst_27 : f32 to vector<2x64xf32>
    %153 = arith.addf %152, %151 : vector<2x64xf32>
    %154 = arith.divf %152, %153 : vector<2x64xf32>
    %155 = vector.extract_strided_slice %148 {offsets = [0, 64], sizes = [2, 64], strides = [1, 1]} : vector<2x256xf32> to vector<2x64xf32>
    %156 = arith.negf %155 : vector<2x64xf32>
    %157 = math.exp %156 : vector<2x64xf32>
    %cst_28 = arith.constant 1.000000e+00 : f32
    %158 = vector.broadcast %cst_28 : f32 to vector<2x64xf32>
    %159 = arith.addf %158, %157 : vector<2x64xf32>
    %160 = arith.divf %158, %159 : vector<2x64xf32>
    %161 = vector.extract_strided_slice %148 {offsets = [0, 128], sizes = [2, 64], strides = [1, 1]} : vector<2x256xf32> to vector<2x64xf32>
    %162 = math.tanh %161 : vector<2x64xf32>
    %163 = vector.extract_strided_slice %148 {offsets = [0, 192], sizes = [2, 64], strides = [1, 1]} : vector<2x256xf32> to vector<2x64xf32>
    %164 = arith.negf %163 : vector<2x64xf32>
    %165 = math.exp %164 : vector<2x64xf32>
    %cst_29 = arith.constant 1.000000e+00 : f32
    %166 = vector.broadcast %cst_29 : f32 to vector<2x64xf32>
    %167 = arith.addf %166, %165 : vector<2x64xf32>
    %168 = arith.divf %166, %167 : vector<2x64xf32>
    %169 = arith.mulf %160, %143 : vector<2x64xf32>
    %170 = arith.mulf %154, %162 : vector<2x64xf32>
    %171 = arith.addf %169, %170 : vector<2x64xf32>
    %172 = math.tanh %171 : vector<2x64xf32>
    %173 = arith.mulf %168, %172 : vector<2x64xf32>
    %174 = vector.extract_strided_slice %3 {offsets = [12, 0], sizes = [2, 256], strides = [1, 1]} : vector<18x256xf32> to vector<2x256xf32>
    %cst_30 = arith.constant dense<0.000000e+00> : vector<2x256xf32>
    %175 = tpu.matmul %173, %1, %cst_30 {dimension_numbers = #tpu.dot_dimension_numbers<[1], [0], [0], [1], [0, 0, 1, 1], [], []>} : vector<2x64xf32>, vector<64x256xf32>, vector<2x256xf32> -> vector<2x256xf32>
    %176 = arith.addf %174, %175 : vector<2x256xf32>
    %177 = vector.extract_strided_slice %176 {offsets = [0, 0], sizes = [2, 64], strides = [1, 1]} : vector<2x256xf32> to vector<2x64xf32>
    %178 = arith.negf %177 : vector<2x64xf32>
    %179 = math.exp %178 : vector<2x64xf32>
    %cst_31 = arith.constant 1.000000e+00 : f32
    %180 = vector.broadcast %cst_31 : f32 to vector<2x64xf32>
    %181 = arith.addf %180, %179 : vector<2x64xf32>
    %182 = arith.divf %180, %181 : vector<2x64xf32>
    %183 = vector.extract_strided_slice %176 {offsets = [0, 64], sizes = [2, 64], strides = [1, 1]} : vector<2x256xf32> to vector<2x64xf32>
    %184 = arith.negf %183 : vector<2x64xf32>
    %185 = math.exp %184 : vector<2x64xf32>
    %cst_32 = arith.constant 1.000000e+00 : f32
    %186 = vector.broadcast %cst_32 : f32 to vector<2x64xf32>
    %187 = arith.addf %186, %185 : vector<2x64xf32>
    %188 = arith.divf %186, %187 : vector<2x64xf32>
    %189 = vector.extract_strided_slice %176 {offsets = [0, 128], sizes = [2, 64], strides = [1, 1]} : vector<2x256xf32> to vector<2x64xf32>
    %190 = math.tanh %189 : vector<2x64xf32>
    %191 = vector.extract_strided_slice %176 {offsets = [0, 192], sizes = [2, 64], strides = [1, 1]} : vector<2x256xf32> to vector<2x64xf32>
    %192 = arith.negf %191 : vector<2x64xf32>
    %193 = math.exp %192 : vector<2x64xf32>
    %cst_33 = arith.constant 1.000000e+00 : f32
    %194 = vector.broadcast %cst_33 : f32 to vector<2x64xf32>
    %195 = arith.addf %194, %193 : vector<2x64xf32>
    %196 = arith.divf %194, %195 : vector<2x64xf32>
    %197 = arith.mulf %188, %171 : vector<2x64xf32>
    %198 = arith.mulf %182, %190 : vector<2x64xf32>
    %199 = arith.addf %197, %198 : vector<2x64xf32>
    %200 = math.tanh %199 : vector<2x64xf32>
    %201 = arith.mulf %196, %200 : vector<2x64xf32>
    %202 = vector.extract_strided_slice %3 {offsets = [14, 0], sizes = [2, 256], strides = [1, 1]} : vector<18x256xf32> to vector<2x256xf32>
    %cst_34 = arith.constant dense<0.000000e+00> : vector<2x256xf32>
    %203 = tpu.matmul %201, %1, %cst_34 {dimension_numbers = #tpu.dot_dimension_numbers<[1], [0], [0], [1], [0, 0, 1, 1], [], []>} : vector<2x64xf32>, vector<64x256xf32>, vector<2x256xf32> -> vector<2x256xf32>
    %204 = arith.addf %202, %203 : vector<2x256xf32>
    %205 = vector.extract_strided_slice %204 {offsets = [0, 0], sizes = [2, 64], strides = [1, 1]} : vector<2x256xf32> to vector<2x64xf32>
    %206 = arith.negf %205 : vector<2x64xf32>
    %207 = math.exp %206 : vector<2x64xf32>
    %cst_35 = arith.constant 1.000000e+00 : f32
    %208 = vector.broadcast %cst_35 : f32 to vector<2x64xf32>
    %209 = arith.addf %208, %207 : vector<2x64xf32>
    %210 = arith.divf %208, %209 : vector<2x64xf32>
    %211 = vector.extract_strided_slice %204 {offsets = [0, 64], sizes = [2, 64], strides = [1, 1]} : vector<2x256xf32> to vector<2x64xf32>
    %212 = arith.negf %211 : vector<2x64xf32>
    %213 = math.exp %212 : vector<2x64xf32>
    %cst_36 = arith.constant 1.000000e+00 : f32
    %214 = vector.broadcast %cst_36 : f32 to vector<2x64xf32>
    %215 = arith.addf %214, %213 : vector<2x64xf32>
    %216 = arith.divf %214, %215 : vector<2x64xf32>
    %217 = vector.extract_strided_slice %204 {offsets = [0, 128], sizes = [2, 64], strides = [1, 1]} : vector<2x256xf32> to vector<2x64xf32>
    %218 = math.tanh %217 : vector<2x64xf32>
    %219 = vector.extract_strided_slice %204 {offsets = [0, 192], sizes = [2, 64], strides = [1, 1]} : vector<2x256xf32> to vector<2x64xf32>
    %220 = arith.negf %219 : vector<2x64xf32>
    %221 = math.exp %220 : vector<2x64xf32>
    %cst_37 = arith.constant 1.000000e+00 : f32
    %222 = vector.broadcast %cst_37 : f32 to vector<2x64xf32>
    %223 = arith.addf %222, %221 : vector<2x64xf32>
    %224 = arith.divf %222, %223 : vector<2x64xf32>
    %225 = arith.mulf %216, %199 : vector<2x64xf32>
    %226 = arith.mulf %210, %218 : vector<2x64xf32>
    %227 = arith.addf %225, %226 : vector<2x64xf32>
    %228 = math.tanh %227 : vector<2x64xf32>
    %229 = arith.mulf %224, %228 : vector<2x64xf32>
    %230 = vector.extract_strided_slice %3 {offsets = [16, 0], sizes = [2, 256], strides = [1, 1]} : vector<18x256xf32> to vector<2x256xf32>
    %cst_38 = arith.constant dense<0.000000e+00> : vector<2x256xf32>
    %231 = tpu.matmul %229, %1, %cst_38 {dimension_numbers = #tpu.dot_dimension_numbers<[1], [0], [0], [1], [0, 0, 1, 1], [], []>} : vector<2x64xf32>, vector<64x256xf32>, vector<2x256xf32> -> vector<2x256xf32>
    %232 = arith.addf %230, %231 : vector<2x256xf32>
    %233 = vector.extract_strided_slice %232 {offsets = [0, 0], sizes = [2, 64], strides = [1, 1]} : vector<2x256xf32> to vector<2x64xf32>
    %234 = arith.negf %233 : vector<2x64xf32>
    %235 = math.exp %234 : vector<2x64xf32>
    %cst_39 = arith.constant 1.000000e+00 : f32
    %236 = vector.broadcast %cst_39 : f32 to vector<2x64xf32>
    %237 = arith.addf %236, %235 : vector<2x64xf32>
    %238 = arith.divf %236, %237 : vector<2x64xf32>
    %239 = vector.extract_strided_slice %232 {offsets = [0, 64], sizes = [2, 64], strides = [1, 1]} : vector<2x256xf32> to vector<2x64xf32>
    %240 = arith.negf %239 : vector<2x64xf32>
    %241 = math.exp %240 : vector<2x64xf32>
    %cst_40 = arith.constant 1.000000e+00 : f32
    %242 = vector.broadcast %cst_40 : f32 to vector<2x64xf32>
    %243 = arith.addf %242, %241 : vector<2x64xf32>
    %244 = arith.divf %242, %243 : vector<2x64xf32>
    %245 = vector.extract_strided_slice %232 {offsets = [0, 128], sizes = [2, 64], strides = [1, 1]} : vector<2x256xf32> to vector<2x64xf32>
    %246 = math.tanh %245 : vector<2x64xf32>
    %247 = vector.extract_strided_slice %232 {offsets = [0, 192], sizes = [2, 64], strides = [1, 1]} : vector<2x256xf32> to vector<2x64xf32>
    %248 = arith.negf %247 : vector<2x64xf32>
    %249 = math.exp %248 : vector<2x64xf32>
    %cst_41 = arith.constant 1.000000e+00 : f32
    %250 = vector.broadcast %cst_41 : f32 to vector<2x64xf32>
    %251 = arith.addf %250, %249 : vector<2x64xf32>
    %252 = arith.divf %250, %251 : vector<2x64xf32>
    %253 = arith.mulf %244, %227 : vector<2x64xf32>
    %254 = arith.mulf %238, %246 : vector<2x64xf32>
    %255 = arith.addf %253, %254 : vector<2x64xf32>
    %256 = math.tanh %255 : vector<2x64xf32>
    %257 = arith.mulf %252, %256 : vector<2x64xf32>
    %258 = vector.shape_cast %61 : vector<2x64xf32> to vector<1x2x64xf32>
    %259 = vector.shape_cast %89 : vector<2x64xf32> to vector<1x2x64xf32>
    %260 = vector.shape_cast %117 : vector<2x64xf32> to vector<1x2x64xf32>
    %261 = vector.shape_cast %145 : vector<2x64xf32> to vector<1x2x64xf32>
    %262 = vector.shape_cast %173 : vector<2x64xf32> to vector<1x2x64xf32>
    %263 = vector.shape_cast %201 : vector<2x64xf32> to vector<1x2x64xf32>
    %264 = vector.shape_cast %229 : vector<2x64xf32> to vector<1x2x64xf32>
    %265 = vector.shape_cast %257 : vector<2x64xf32> to vector<1x2x64xf32>
    %266 = tpu.concatenate %258, %259, %260, %261, %262, %263, %264, %265 in 0 : vector<1x2x64xf32>, vector<1x2x64xf32>, vector<1x2x64xf32>, vector<1x2x64xf32>, vector<1x2x64xf32>, vector<1x2x64xf32>, vector<1x2x64xf32>, vector<1x2x64xf32> -> vector<8x2x64xf32>
    %267 = vector.extract_strided_slice %266 {offsets = [0, 0, 32], sizes = [8, 2, 32], strides = [1, 1, 1]} : vector<8x2x64xf32> to vector<8x2x32xf32>
    %c0_42 = arith.constant 0 : index
    %c0_43 = arith.constant 0 : index
    %c0_44 = arith.constant 0 : index
    %268 = vector.load %arg2[%c0_42, %c0_43, %c0_44] : memref<8x2x32xf32, #tpu.memory_space<vmem>>, vector<8x2x32xf32>
    tpu.vector_store %arg2[%c0_42, %c0_43, %c0_44], %267 {strides = array<i32>} : memref<8x2x32xf32, #tpu.memory_space<vmem>>, vector<8x2x32xf32>,
    %269 = vector.extract_strided_slice %267 {offsets = [0, 1, 0], sizes = [8, 1, 32], strides = [1, 1, 1]} : vector<8x2x32xf32> to vector<8x1x32xf32>
    %270 = vector.shape_cast %269 : vector<8x1x32xf32> to vector<8x32xf32>
    %c88 = arith.constant 88 : index
    %c0_45 = arith.constant 0 : index
    %271 = vector.load %arg1[%c88, %c0_45] : memref<128x256xf32, #tpu.memory_space<vmem>>, vector<32x256xf32>
    %c120 = arith.constant 120 : index
    %c0_46 = arith.constant 0 : index
    %272 = vector.load %arg1[%c120, %c0_46] : memref<128x256xf32, #tpu.memory_space<vmem>>, vector<1x256xf32>
    %cst_47 = arith.constant dense<0.000000e+00> : vector<8x256xf32>
    %273 = tpu.matmul %270, %271, %cst_47 {dimension_numbers = #tpu.dot_dimension_numbers<[1], [0], [0], [1], [0, 0, 1, 1], [], []>} : vector<8x32xf32>, vector<32x256xf32>, vector<8x256xf32> -> vector<8x256xf32>
    %274 = vector.broadcast %272 : vector<1x256xf32> to vector<8x256xf32>
    %275 = arith.addf %273, %274 : vector<8x256xf32>
    %276 = vector.extract_strided_slice %275 {offsets = [0, 0], sizes = [8, 1], strides = [1, 1]} : vector<8x256xf32> to vector<8x1xf32>
    %277 = arith.negf %276 : vector<8x1xf32>
    %278 = math.exp %277 : vector<8x1xf32>
    %cst_48 = arith.constant 1.000000e+00 : f32
    %279 = vector.broadcast %cst_48 : f32 to vector<8x1xf32>
    %280 = arith.addf %279, %278 : vector<8x1xf32>
    %281 = arith.divf %279, %280 : vector<8x1xf32>
    %c0_49 = arith.constant 0 : index
    %c0_50 = arith.constant 0 : index
    %282 = vector.load %arg3[%c0_49, %c0_50] : memref<8x1xf32, #tpu.memory_space<vmem>>, vector<8x1xf32>
    tpu.vector_store %arg3[%c0_49, %c0_50], %281 {strides = array<i32>} : memref<8x1xf32, #tpu.memory_space<vmem>>, vector<8x1xf32>,
    return
  }
}

</mosaic_0001>

<bundles_post_ra>
// kernel: lstm_forward.1
= control target key start
LH: loop header
LB: loop body
LE: loop exit
PB: predicated region body
PF: predicated region fallthrough
CT: control target
= control target key end

     0   :  { %vm39_vm0 = vcmask 195584   ;;  %s1798_s0 = inlined_call_operand.vmem [shape: f32[18,24], index: 0, kind: input, shape index: {}]   ;;  %s1799_s1 = inlined_call_operand.vmem [shape: f32[128,256], index: 1, kind: input, shape index: {}]   ;;  %s1800_s2 = inlined_call_operand.hbm [shape: f32[8,2,32], index: 2, kind: output, shape index: {0}]   ;;  %s1801_s3 = inlined_call_operand.vmem [shape: f32[8,1], index: 3, kind: output, shape index: {1}]  }
   0x1   :  { %v1373_v0 = vld [vmem:[%s1799_s1 + $0xa0] sm:$0xff]  ;;  %v1378_v1 = vld [vmem:[%s1799_s1 + $0x90] sm:$0xff]  ;;  %v1384_v2 = vld [vmem:[%s1799_s1 + $0xa8] sm:$0xff] }
   0x2   :  { %113 = vmatpush.msra.mxu2 %v1373_v0  ;;  %v1389_v3 = vld [vmem:[%s1799_s1 + $0x80] sm:$0xff]  ;;  %133 = vmatpush.msra.mxu3 %v1384_v2  ;;  %v1395_v4 = vld [vmem:[%s1799_s1 + $0x98] sm:$0xff]  ;;  %v1401_v5 = vld [vmem:[%s1799_s1 + $0x88] sm:$0xff] }
   0x3   :  { %v1406_v6 = vld [vmem:[%s1799_s1 + $0x70] sm:$0xff]  ;;  %v18_v7 = vld [vmem:[%s1799_s1 + $0x20] sm:$0xff]  ;;  %v1419_v9 = vld [vmem:[%s1799_s1 + $0x78] sm:$0xff] }
   0x4   :  { %114 = vmatpush.msra.mxu2 %v1378_v1  ;;  %134 = vmatpush.msra.mxu3 %v1395_v4  ;;  %v16_v8 = vld [vmem:[%s1799_s1 + $0x10] sm:$0xff]  ;;  %v1424_v10 = vld [vmem:[%s1799_s1 + $0x60] sm:$0xff]  ;;  %v19_v12 = vld [vmem:[%s1799_s1 + $0x28] sm:$0xff] }
   0x5   :  { %62 = vmatpush.msra.mxu0 %v18_v7  ;;  %v14_v11 = vld [vmem:[%s1799_s1] sm:$0xff]  ;;  %v1437_v13 = vld [vmem:[%s1799_s1 + $0x68] sm:$0xff] }
   0x6   :  { %115 = vmatpush.msra.mxu2 %v1389_v3  ;;  %135 = vmatpush.msra.mxu3 %v1401_v5  ;;  %v36_v14 = vld [vmem:[%s1798_s0] sm:$0xff] }
   0x7   :  { %63 = vmatpush.msra.mxu0 %v16_v8 }
   0x8   :  { %116 = vmatpush.msra.mxu2 %v1406_v6 }
   0x9   :  { %9 = vsyncpa [#allocation3], 0  ;;  %v1445_v15 = vld [vmem:[%s1799_s1 + $0x50] sm:$0xff]  ;;  %136 = vmatpush.msra.mxu3 %v1419_v9  ;;  %88 = vmatpush.msra.mxu1 %v19_v12  ;;  %v17_v16 = vld [vmem:[%s1799_s1 + $0x18] sm:$0xff]  ;;  %v1345_v23 = vmov 0.0   ;;  %s1346_s4 = smov 64  }
   0xa   :  { %117 = vmatpush.msra.mxu2 %v1424_v10  ;;  %v1455_v17 = vld [vmem:[%s1799_s1 + $0x58] sm:$0xff]  ;;  %64 = vmatpush.msra.mxu0 %v14_v11  ;;  %v1460_v18 = vld [vmem:[%s1799_s1 + $0x40] sm:$0xff]  ;;  %v15_v19 = vld [vmem:[%s1799_s1 + $0x8] sm:$0xff]  ;;  %vm101_vm9 = vcmask 523264   ;;  %s1348_s17 = smov [#allocation2]   ;;  %s1143_s21 = sshll.u32 %s1800_s2, 4  ;;  %s1144_s21 = int_to_ptr.hbm [resolvable:$true] %s1143_s21 }
   0xb   :  { %137 = vmatpush.msra.mxu3 %v1437_v13  ;;  %1159 = vmatmul.msk.f32.vlgmr.msra.gmra.mxu0 %vm39_vm0, %v36_v14  ;;  %v1471_v20 = vld [vmem:[%s1799_s1 + $0x48] sm:$0xff]  ;;  %v1476_v21 = vld [vmem:[%s1799_s1 + $0x30] sm:$0xff]  ;;  %v1484_v22 = vld [vmem:[%s1799_s1 + $0x38] sm:$0xff]  ;;  %s1141_s18 = sshll.u32 %s1348_s17, 4  ;;  %s1349_s22 = smov 2   ;;  %s1142_s18 = int_to_ptr.vmem [resolvable:$true] %s1141_s18 }
   0xc   :  { %118 = vmatpush.msra.mxu2 %v1445_v15  ;;  %89 = vmatpush.msra.mxu1 %v17_v16  ;;  %v37_v48 = vld [vmem:[%s1798_s0 + $0x8] sm:$0xff]  ;;  %v38_v49 = vld [vmem:[%s1798_s0 + $0x10] sm:$0x3]  ;;  %s1347_s0 = smov 32  }
   0xd   :  { %138 = vmatpush.msra.mxu3 %v1455_v17  ;;  %208 = vmatpush.msrb.mxu0 %v1373_v0 }
   0xe   :  { %119 = vmatpush.msra.mxu2 %v1460_v18  ;;  %90 = vmatpush.msra.mxu1 %v15_v19 }
   0xf   :  { %139 = vmatpush.msra.mxu3 %v1471_v20  ;;  %1162 = vmatmul.msk.f32.vlgmr.msra.gmra.mxu1 %vm39_vm0, %v36_v14 }
  0x10   :  { %120 = vmatpush.msra.mxu2 %v1476_v21  ;;  %209 = vmatpush.msrb.mxu0 %v1378_v1 }
  0x11   :  { %121 = vmatmul.f32.vlgmr.msra.gmra.mxu2 %v1345_v23  ;;  %140 = vmatpush.msra.mxu3 %v1484_v22 }
  0x12   :  { %141 = vmatmul.f32.vlgmr.msra.gmra.mxu3 %v1345_v23  ;;  %210 = vmatpush.msrb.mxu0 %v1389_v3 }
  0x13   :  { %228 = vmatpush.msrb.mxu1 %v1384_v2  ;;  %313 = vmatpush.msrb.mxu2 %v1373_v0 }
  0x14   :  { %211 = vmatpush.msrb.mxu0 %v1406_v6  ;;  %333 = vmatpush.msrb.mxu3 %v1384_v2 }
  0x15   :  { %229 = vmatpush.msrb.mxu1 %v1395_v4  ;;  %314 = vmatpush.msrb.mxu2 %v1378_v1 }
  0x16   :  { %212 = vmatpush.msrb.mxu0 %v1424_v10  ;;  %334 = vmatpush.msrb.mxu3 %v1395_v4 }
  0x17   :  { %230 = vmatpush.msrb.mxu1 %v1401_v5  ;;  %315 = vmatpush.msrb.mxu2 %v1389_v3 }
  0x18   :  { %213 = vmatpush.msrb.mxu0 %v1445_v15  ;;  %335 = vmatpush.msrb.mxu3 %v1401_v5 }
  0x19   :  { %231 = vmatpush.msrb.mxu1 %v1419_v9  ;;  %316 = vmatpush.msrb.mxu2 %v1406_v6 }
  0x1a   :  { %214 = vmatpush.msrb.mxu0 %v1460_v18  ;;  %336 = vmatpush.msrb.mxu3 %v1419_v9 }
  0x1b   :  { %232 = vmatpush.msrb.mxu1 %v1437_v13  ;;  %317 = vmatpush.msrb.mxu2 %v1424_v10 }
  0x1c   :  { %215 = vmatpush.msrb.mxu0 %v1476_v21  ;;  %337 = vmatpush.msrb.mxu3 %v1437_v13 }
  0x1d   :  { %233 = vmatpush.msrb.mxu1 %v1455_v17  ;;  %318 = vmatpush.msrb.mxu2 %v1445_v15 }
  0x1e   :  { %338 = vmatpush.msrb.mxu3 %v1455_v17  ;;  %418 = vmatpush.msra.mxu0 %v1373_v0 }
  0x1f   :  { %234 = vmatpush.msrb.mxu1 %v1471_v20  ;;  %319 = vmatpush.msrb.mxu2 %v1460_v18 }
  0x20   :  { %339 = vmatpush.msrb.mxu3 %v1471_v20  ;;  %419 = vmatpush.msra.mxu0 %v1378_v1 }
  0x21   :  { %235 = vmatpush.msrb.mxu1 %v1484_v22  ;;  %320 = vmatpush.msrb.mxu2 %v1476_v21 }
  0x22   :  { %340 = vmatpush.msrb.mxu3 %v1484_v22  ;;  %420 = vmatpush.msra.mxu0 %v1389_v3 }
  0x23   :  { %438 = vmatpush.msra.mxu1 %v1384_v2  ;;  %523 = vmatpush.msra.mxu2 %v1373_v0 }
  0x24   :  { %543 = vmatpush.msra.mxu3 %v1384_v2  ;;  %421 = vmatpush.msra.mxu0 %v1406_v6 }
  0x25   :  { %439 = vmatpush.msra.mxu1 %v1395_v4  ;;  %524 = vmatpush.msra.mxu2 %v1378_v1 }
  0x26   :  { %544 = vmatpush.msra.mxu3 %v1395_v4  ;;  %422 = vmatpush.msra.mxu0 %v1424_v10 }
  0x27   :  { %440 = vmatpush.msra.mxu1 %v1401_v5  ;;  %525 = vmatpush.msra.mxu2 %v1389_v3 }
  0x28   :  { %545 = vmatpush.msra.mxu3 %v1401_v5  ;;  %423 = vmatpush.msra.mxu0 %v1445_v15 }
  0x29   :  { %441 = vmatpush.msra.mxu1 %v1419_v9  ;;  %526 = vmatpush.msra.mxu2 %v1406_v6 }
  0x2a   :  { %546 = vmatpush.msra.mxu3 %v1419_v9  ;;  %424 = vmatpush.msra.mxu0 %v1460_v18 }
  0x2b   :  { %442 = vmatpush.msra.mxu1 %v1437_v13  ;;  %527 = vmatpush.msra.mxu2 %v1424_v10 }
  0x2c   :  { %547 = vmatpush.msra.mxu3 %v1437_v13  ;;  %425 = vmatpush.msra.mxu0 %v1476_v21 }
  0x2d   :  { %443 = vmatpush.msra.mxu1 %v1455_v17  ;;  %528 = vmatpush.msra.mxu2 %v1445_v15 }
  0x2e   :  { %548 = vmatpush.msra.mxu3 %v1455_v17  ;;  %1160 = vmatmul.msk.f32.gmra.mxu0 %vm39_vm0, %v37_v48 }
  0x2f   :  { %444 = vmatpush.msra.mxu1 %v1471_v20  ;;  %529 = vmatpush.msra.mxu2 %v1460_v18 }
  0x30   :  { %549 = vmatpush.msra.mxu3 %v1471_v20  ;;  %1163 = vmatmul.msk.f32.gmra.mxu1 %vm39_vm0, %v37_v48 }
  0x31   :  { %445 = vmatpush.msra.mxu1 %v1484_v22  ;;  %530 = vmatpush.msra.mxu2 %v1476_v21 }
  0x32   :  { %550 = vmatpush.msra.mxu3 %v1484_v22 }
  0x36   :  { %1161 = vmatmul.msk.f32.gmra.mxu0 %vm39_vm0, %v38_v49 }
  0x38   :  { %1164 = vmatmul.msk.f32.gmra.mxu1 %vm39_vm0, %v38_v49 }
  0x88   :  { %v1553_v24 = vpop.f32.mrf.mxu0 }
  0x8c   :  { %v1556_v30 = vpop.f32.mrf.mxu1 }
  0x94   :  { %v122_v25 = vpop.f32.mrf.mxu2 }
  0x95   :  { %v145_v26 = vadd.f32 %v122_v25, %v1553_v24  ;;  %v142_v31 = vpop.f32.mrf.mxu3 }
  0x96   :  { %v146_v33 = vadd.f32 %v142_v31, %v1556_v30 }
  0x97   :  { %v1165_v27 = vmul.f32 -1.442695, %v145_v26 }
  0x98   :  { %v1166_v45 = vmul.f32 -1.442695, %v146_v33 }
  0x99   :  { %1207 = vpow2.f32 %v1165_v27 }
  0x9f   :  { %v1208_v28 = vpop.eup %1207 }
  0xa0   :  { %v150_v29 = vadd.f32 1.0, %v1208_v28 }
  0xa2   :  { %1209 = vrcp.f32 %v150_v29  ;;  %v162_v36 = vand.u32 2147483648, %v150_v29  ;;  %v160_v38 = vand.u32 2147483647, %v150_v29  ;;  %vm156_vm2 = vweird.f32 %v150_v29 }
  0xa3   :  { %1211 = vtanh.f32 %v146_v33 }
  0xa4   :  { %v163_v41 = vor.u32 1.1754944e-38, %v162_v36  ;;  %vm161_vm4 = vcmp.eq.f32.partialorder %v160_v38, 8.507059e+37  ;;  %1213 = vpow2.f32 %v1166_v45 }
  0xa8   :  { %v1210_v32 = vpop.eup %1209 }
  0xa9   :  { %v152_v34 = vmul.f32 %v1210_v32, %v150_v29  ;;  %vm157_vm1 = vweird.f32 %v1210_v32  ;;  %v1212_v40 = vpop.eup %1211 }
  0xaa   :  { %vm158_vm3 = vmor %vm156_vm2, %vm157_vm1  ;;  %v1214_v46 = vpop.eup %1213 }
  0xab   :  { %v153_v35 = vsub.f32 1.0, %v152_v34  ;;  %v170_v47 = vadd.f32 1.0, %v1214_v46  ;;  %v1592_v11 = vpop.f32.mrf.mxu0 }
  0xad   :  { %v154_v37 = vmul.f32 %v1210_v32, %v153_v35  ;;  %1215 = vrcp.f32 %v170_v47  ;;  %vm176_vm5 = vweird.f32 %v170_v47  ;;  %v182_v57 = vand.u32 2147483648, %v170_v47  ;;  %v1596_v14 = vpop.f32.mrf.mxu1 }
  0xae   :  { %v180_v59 = vand.u32 2147483647, %v170_v47 }
  0xaf   :  { %v155_v39 = vadd.f32 %v1210_v32, %v154_v37  ;;  %v183_v60 = vor.u32 1.1754944e-38, %v182_v57 }
  0xb0   :  { %vm181_vm8 = vcmp.eq.f32.partialorder %v180_v59, 8.507059e+37 }
  0xb1   :  { %v159_v42 = vsel %vm158_vm3, %v1210_v32, %v155_v39 }
  0xb2   :  { %v164_v43 = vsel %vm161_vm4, %v163_v41, %v159_v42 }
  0xb3   :  { %v187_v44 = vmul.f32 %v1212_v40, %v164_v43  ;;  %v1216_v50 = vpop.eup %1215  ;;  %v186_v54 = vmul.f32 0.0, %v164_v43  ;;  %v1594_v12 = vpop.f32.mrf.mxu0 }
  0xb4   :  { %v172_v51 = vmul.f32 %v1216_v50, %v170_v47  ;;  %vm177_vm6 = vweird.f32 %v1216_v50 }
  0xb5   :  { %189 = vrot.lane.b32.xlu0 %v187_v44, %s1346_s4  ;;  %vm178_vm7 = vmor %vm176_vm5, %vm177_vm6  ;;  %v1599_v25 = vpop.f32.mrf.mxu1 }
  0xb6   :  { %v173_v52 = vsub.f32 1.0, %v172_v51 }
  0xb8   :  { %v174_v53 = vmul.f32 %v1216_v50, %v173_v52 }
  0xba   :  { %v175_v58 = vadd.f32 %v1216_v50, %v174_v53 }
  0xbc   :  { %v179_v61 = vsel %vm178_vm7, %v1216_v50, %v175_v58 }
  0xbd   :  { %v184_v63 = vsel %vm181_vm8, %v183_v60, %v179_v61 }
 0x127   :  { %v190_v55 = vpop.permute.xlu0 %189 }
 0x128   :  { %v1570_v56 = vadd.f32 %v190_v55, %v186_v54 }
 0x12a   :  { %1217 = vtanh.f32 %v1570_v56  ;;  %v288_v41 = vrot.slane %v1570_v56, 6 }
 0x130   :  { %v1218_v62 = vpop.eup %1217 }
 0x131   :  { %v194_v7 = vmul.f32 %v1218_v62, %v184_v63 }
 0x133   :  { %196 = vrot.lane.b32.xlu0 %v194_v7, %s1346_s4 }
 0x1a5   :  { %v197_v8 = vpop.permute.xlu0 %196 }
 0x1a6   :  { %1167 = vmatmul.msk.f32.vlgmr.msrb.gmra.mxu0 %vm101_vm9, %v197_v8  ;;  %1168 = vmatmul.msk.f32.vlgmr.msrb.gmra.mxu1 %vm101_vm9, %v197_v8 }
 0x1a7   :  { %621 = vmatpush.msrb.mxu0 %v1373_v0  ;;  %641 = vmatpush.msrb.mxu1 %v1384_v2 }
 0x1a9   :  { %622 = vmatpush.msrb.mxu0 %v1378_v1  ;;  %642 = vmatpush.msrb.mxu1 %v1395_v4 }
 0x1ab   :  { %623 = vmatpush.msrb.mxu0 %v1389_v3  ;;  %643 = vmatpush.msrb.mxu1 %v1401_v5 }
 0x1ad   :  { %624 = vmatpush.msrb.mxu0 %v1406_v6  ;;  %644 = vmatpush.msrb.mxu1 %v1419_v9 }
 0x1af   :  { %625 = vmatpush.msrb.mxu0 %v1424_v10  ;;  %645 = vmatpush.msrb.mxu1 %v1437_v13 }
 0x1b1   :  { %626 = vmatpush.msrb.mxu0 %v1445_v15  ;;  %646 = vmatpush.msrb.mxu1 %v1455_v17 }
 0x1b3   :  { %627 = vmatpush.msrb.mxu0 %v1460_v18  ;;  %647 = vmatpush.msrb.mxu1 %v1471_v20 }
 0x1b5   :  { %628 = vmatpush.msrb.mxu0 %v1476_v21  ;;  %648 = vmatpush.msrb.mxu1 %v1484_v22 }
 0x223   :  { %v217_v16 = vpop.f32.mrf.mxu0  ;;  %v237_v29 = vpop.f32.mrf.mxu1 }
 0x224   :  { %v242_v19 = vrot.slane %v217_v16, 6  ;;  %v243_v31 = vrot.slane %v237_v29, 6 }
 0x226   :  { %v246_v23 = vadd.f32 %v242_v19, %v1553_v24  ;;  %v247_v33 = vadd.f32 %v243_v31, %v1556_v30 }
 0x228   :  { %v1169_v26 = vmul.f32 -1.442695, %v246_v23  ;;  %v1170_v47 = vmul.f32 -1.442695, %v247_v33 }
 0x22a   :  { %1219 = vpow2.f32 %v1169_v26 }
 0x230   :  { %v1220_v27 = vpop.eup %1219 }
 0x231   :  { %v251_v28 = vadd.f32 1.0, %v1220_v27 }
 0x233   :  { %1221 = vrcp.f32 %v251_v28  ;;  %v263_v36 = vand.u32 2147483648, %v251_v28  ;;  %v261_v38 = vand.u32 2147483647, %v251_v28  ;;  %vm257_vm11 = vweird.f32 %v251_v28 }
 0x234   :  { %1223 = vtanh.f32 %v247_v33 }
 0x235   :  { %v264_v40 = vor.u32 1.1754944e-38, %v263_v36  ;;  %vm262_vm13 = vcmp.eq.f32.partialorder %v261_v38, 8.507059e+37  ;;  %1225 = vpow2.f32 %v1170_v47 }
 0x239   :  { %v1222_v32 = vpop.eup %1221 }
 0x23a   :  { %v253_v34 = vmul.f32 %v1222_v32, %v251_v28  ;;  %vm258_vm10 = vweird.f32 %v1222_v32  ;;  %v1224_v43 = vpop.eup %1223 }
 0x23b   :  { %vm259_vm12 = vmor %vm257_vm11, %vm258_vm10  ;;  %v1226_v48 = vpop.eup %1225 }
 0x23c   :  { %v254_v35 = vsub.f32 1.0, %v253_v34  ;;  %v271_v49 = vadd.f32 1.0, %v1226_v48 }
 0x23e   :  { %v255_v37 = vmul.f32 %v1222_v32, %v254_v35  ;;  %1227 = vrcp.f32 %v271_v49  ;;  %v283_v57 = vand.u32 2147483648, %v271_v49  ;;  %vm277_vm15 = vweird.f32 %v271_v49 }
 0x23f   :  { %v281_v58 = vand.u32 2147483647, %v271_v49 }
 0x240   :  { %v256_v39 = vadd.f32 %v1222_v32, %v255_v37  ;;  %v284_v60 = vor.u32 1.1754944e-38, %v283_v57 }
 0x241   :  { %vm282_vm1 = vcmp.eq.f32.partialorder %v281_v58, 8.507059e+37 }
 0x242   :  { %v260_v42 = vsel %vm259_vm12, %v1222_v32, %v256_v39 }
 0x243   :  { %v265_v44 = vsel %vm262_vm13, %v264_v40, %v260_v42 }
 0x244   :  { %v291_v45 = vmul.f32 %v1224_v43, %v265_v44  ;;  %v290_v46 = vmul.f32 %v288_v41, %v265_v44  ;;  %v1228_v50 = vpop.eup %1227 }
 0x245   :  { %v273_v51 = vmul.f32 %v1228_v50, %v271_v49  ;;  %vm278_vm14 = vweird.f32 %v1228_v50 }
 0x246   :  { %293 = vrot.lane.b32.xlu1 %v291_v45, %s1346_s4  ;;  %vm279_vm0 = vmor %vm277_vm15, %vm278_vm14 }
 0x247   :  { %v274_v52 = vsub.f32 1.0, %v273_v51 }
 0x249   :  { %v275_v53 = vmul.f32 %v1228_v50, %v274_v52 }
 0x24b   :  { %v276_v56 = vadd.f32 %v1228_v50, %v275_v53 }
 0x24d   :  { %v280_v59 = vsel %vm279_vm0, %v1228_v50, %v276_v56 }
 0x24e   :  { %v285_v62 = vsel %vm282_vm1, %v284_v60, %v280_v59 }
 0x2b8   :  { %v294_v54 = vpop.permute.xlu1 %293 }
 0x2b9   :  { %v1604_v55 = vadd.f32 %v294_v54, %v290_v46 }
 0x2bb   :  { %1229 = vtanh.f32 %v1604_v55  ;;  %v393_v41 = vrot.slane %v1604_v55, 6 }
 0x2c1   :  { %v1230_v61 = vpop.eup %1229 }
 0x2c2   :  { %v1607_v63 = vmul.f32 %v1230_v61, %v285_v62 }
 0x2c4   :  { %v300_v7 = vrot.slane %v1607_v63, 2 }
 0x2c6   :  { %301 = vrot.lane.b32.xlu1 %v300_v7, %s1346_s4 }
 0x338   :  { %v302_v8 = vpop.permute.xlu1 %301 }
 0x339   :  { %1171 = vmatmul.msk.f32.vlgmr.msrb.gmra.mxu2 %vm101_vm9, %v302_v8  ;;  %1172 = vmatmul.msk.f32.vlgmr.msrb.gmra.mxu3 %vm101_vm9, %v302_v8 }
 0x33a   :  { %726 = vmatpush.msrb.mxu2 %v1373_v0  ;;  %746 = vmatpush.msrb.mxu3 %v1384_v2 }
 0x33c   :  { %727 = vmatpush.msrb.mxu2 %v1378_v1  ;;  %747 = vmatpush.msrb.mxu3 %v1395_v4 }
 0x33e   :  { %728 = vmatpush.msrb.mxu2 %v1389_v3  ;;  %748 = vmatpush.msrb.mxu3 %v1401_v5 }
 0x340   :  { %729 = vmatpush.msrb.mxu2 %v1406_v6  ;;  %749 = vmatpush.msrb.mxu3 %v1419_v9 }
 0x342   :  { %730 = vmatpush.msrb.mxu2 %v1424_v10  ;;  %750 = vmatpush.msrb.mxu3 %v1437_v13 }
 0x344   :  { %731 = vmatpush.msrb.mxu2 %v1445_v15  ;;  %751 = vmatpush.msrb.mxu3 %v1455_v17 }
 0x346   :  { %732 = vmatpush.msrb.mxu2 %v1460_v18  ;;  %752 = vmatpush.msrb.mxu3 %v1471_v20 }
 0x348   :  { %733 = vmatpush.msrb.mxu2 %v1476_v21  ;;  %753 = vmatpush.msrb.mxu3 %v1484_v22 }
 0x3bc   :  { %v322_v16 = vpop.f32.mrf.mxu2  ;;  %v342_v29 = vpop.f32.mrf.mxu3 }
 0x3bd   :  { %v347_v19 = vrot.slane %v322_v16, 4  ;;  %v348_v31 = vrot.slane %v342_v29, 4 }
 0x3bf   :  { %v351_v23 = vadd.f32 %v347_v19, %v1553_v24  ;;  %v352_v33 = vadd.f32 %v348_v31, %v1556_v30 }
 0x3c1   :  { %v1173_v26 = vmul.f32 -1.442695, %v351_v23  ;;  %v1174_v47 = vmul.f32 -1.442695, %v352_v33 }
 0x3c3   :  { %1231 = vpow2.f32 %v1173_v26 }
 0x3c9   :  { %v1232_v27 = vpop.eup %1231 }
 0x3ca   :  { %v356_v28 = vadd.f32 1.0, %v1232_v27 }
 0x3cc   :  { %1233 = vrcp.f32 %v356_v28  ;;  %v368_v36 = vand.u32 2147483648, %v356_v28  ;;  %v366_v38 = vand.u32 2147483647, %v356_v28  ;;  %vm362_vm3 = vweird.f32 %v356_v28 }
 0x3cd   :  { %1235 = vtanh.f32 %v352_v33 }
 0x3ce   :  { %v369_v40 = vor.u32 1.1754944e-38, %v368_v36  ;;  %vm367_vm5 = vcmp.eq.f32.partialorder %v366_v38, 8.507059e+37  ;;  %1237 = vpow2.f32 %v1174_v47 }
 0x3d2   :  { %v1234_v32 = vpop.eup %1233 }
 0x3d3   :  { %v358_v34 = vmul.f32 %v1234_v32, %v356_v28  ;;  %vm363_vm2 = vweird.f32 %v1234_v32  ;;  %v1236_v43 = vpop.eup %1235 }
 0x3d4   :  { %vm364_vm4 = vmor %vm362_vm3, %vm363_vm2  ;;  %v1238_v48 = vpop.eup %1237 }
 0x3d5   :  { %v359_v35 = vsub.f32 1.0, %v358_v34  ;;  %v376_v49 = vadd.f32 1.0, %v1238_v48 }
 0x3d7   :  { %v360_v37 = vmul.f32 %v1234_v32, %v359_v35  ;;  %1239 = vrcp.f32 %v376_v49  ;;  %v388_v57 = vand.u32 2147483648, %v376_v49  ;;  %vm382_vm7 = vweird.f32 %v376_v49 }
 0x3d8   :  { %v386_v58 = vand.u32 2147483647, %v376_v49 }
 0x3d9   :  { %v361_v39 = vadd.f32 %v1234_v32, %v360_v37  ;;  %v389_v60 = vor.u32 1.1754944e-38, %v388_v57 }
 0x3da   :  { %vm387_vm10 = vcmp.eq.f32.partialorder %v386_v58, 8.507059e+37 }
 0x3db   :  { %v365_v42 = vsel %vm364_vm4, %v1234_v32, %v361_v39 }
 0x3dc   :  { %v370_v44 = vsel %vm367_vm5, %v369_v40, %v365_v42 }
 0x3dd   :  { %v396_v45 = vmul.f32 %v1236_v43, %v370_v44  ;;  %v395_v46 = vmul.f32 %v393_v41, %v370_v44  ;;  %v1240_v50 = vpop.eup %1239 }
 0x3de   :  { %v378_v51 = vmul.f32 %v1240_v50, %v376_v49  ;;  %vm383_vm6 = vweird.f32 %v1240_v50 }
 0x3df   :  { %398 = vrot.lane.b32.xlu2 %v396_v45, %s1346_s4  ;;  %vm384_vm8 = vmor %vm382_vm7, %vm383_vm6 }
 0x3e0   :  { %v379_v52 = vsub.f32 1.0, %v378_v51 }
 0x3e2   :  { %v380_v53 = vmul.f32 %v1240_v50, %v379_v52 }
 0x3e4   :  { %v381_v55 = vadd.f32 %v1240_v50, %v380_v53 }
 0x3e6   :  { %v385_v59 = vsel %vm384_vm8, %v1240_v50, %v381_v55 }
 0x3e7   :  { %v390_v62 = vsel %vm387_vm10, %v389_v60, %v385_v59 }
 0x439   :  { %v399_v54 = vpop.permute.xlu2 %398 }
 0x43a   :  { %v1633_v56 = vadd.f32 %v399_v54, %v395_v46 }
 0x43c   :  { %1241 = vtanh.f32 %v1633_v56  ;;  %v498_v41 = vrot.slane %v1633_v56, 6 }
 0x442   :  { %v1242_v61 = vpop.eup %1241 }
 0x443   :  { %v1636_v7 = vmul.f32 %v1242_v61, %v390_v62 }
 0x445   :  { %v405_v8 = vrot.slane %v1636_v7, 4 }
 0x447   :  { %406 = vrot.lane.b32.xlu2 %v405_v8, %s1346_s4 }
 0x4a1   :  { %v407_v16 = vpop.permute.xlu2 %406 }
 0x4a2   :  { %1175 = vmatmul.msk.f32.vlgmr.msra.gmra.mxu0 %vm101_vm9, %v407_v16  ;;  %1176 = vmatmul.msk.f32.vlgmr.msra.gmra.mxu1 %vm101_vm9, %v407_v16 }
 0x4a3   :  { %831 = vmatpush.msra.mxu0 %v1373_v0  ;;  %851 = vmatpush.msra.mxu1 %v1384_v2 }
 0x4a5   :  { %832 = vmatpush.msra.mxu0 %v1378_v1  ;;  %852 = vmatpush.msra.mxu1 %v1395_v4 }
 0x4a7   :  { %833 = vmatpush.msra.mxu0 %v1389_v3  ;;  %853 = vmatpush.msra.mxu1 %v1401_v5 }
 0x4a9   :  { %834 = vmatpush.msra.mxu0 %v1406_v6  ;;  %854 = vmatpush.msra.mxu1 %v1419_v9 }
 0x4ab   :  { %835 = vmatpush.msra.mxu0 %v1424_v10  ;;  %855 = vmatpush.msra.mxu1 %v1437_v13 }
 0x4ad   :  { %836 = vmatpush.msra.mxu0 %v1445_v15  ;;  %856 = vmatpush.msra.mxu1 %v1455_v17 }
 0x4af   :  { %837 = vmatpush.msra.mxu0 %v1460_v18  ;;  %857 = vmatpush.msra.mxu1 %v1471_v20 }
 0x4b1   :  { %838 = vmatpush.msra.mxu0 %v1476_v21  ;;  %858 = vmatpush.msra.mxu1 %v1484_v22 }
 0x51f   :  { %v427_v19 = vpop.f32.mrf.mxu0  ;;  %v447_v31 = vpop.f32.mrf.mxu1 }
 0x520   :  { %v452_v23 = vrot.slane %v427_v19, 2  ;;  %v453_v32 = vrot.slane %v447_v31, 2 }
 0x522   :  { %v456_v26 = vadd.f32 %v452_v23, %v1553_v24  ;;  %v457_v34 = vadd.f32 %v453_v32, %v1556_v30 }
 0x524   :  { %v1177_v27 = vmul.f32 -1.442695, %v456_v26  ;;  %v1178_v30 = vmul.f32 -1.442695, %v457_v34 }
 0x526   :  { %1243 = vpow2.f32 %v1177_v27 }
 0x52c   :  { %v1244_v28 = vpop.eup %1243 }
 0x52d   :  { %v461_v29 = vadd.f32 1.0, %v1244_v28 }
 0x52f   :  { %1245 = vrcp.f32 %v461_v29  ;;  %v473_v37 = vand.u32 2147483648, %v461_v29  ;;  %v471_v39 = vand.u32 2147483647, %v461_v29  ;;  %vm467_vm12 = vweird.f32 %v461_v29 }
 0x530   :  { %1247 = vtanh.f32 %v457_v34 }
 0x531   :  { %v474_v24 = vor.u32 1.1754944e-38, %v473_v37  ;;  %vm472_vm14 = vcmp.eq.f32.partialorder %v471_v39, 8.507059e+37  ;;  %1249 = vpow2.f32 %v1178_v30 }
 0x535   :  { %v1246_v33 = vpop.eup %1245 }
 0x536   :  { %v463_v35 = vmul.f32 %v1246_v33, %v461_v29  ;;  %vm468_vm11 = vweird.f32 %v1246_v33  ;;  %v1248_v43 = vpop.eup %1247 }
 0x537   :  { %vm469_vm13 = vmor %vm467_vm12, %vm468_vm11  ;;  %v1250_v47 = vpop.eup %1249 }
 0x538   :  { %v464_v36 = vsub.f32 1.0, %v463_v35  ;;  %v481_v48 = vadd.f32 1.0, %v1250_v47 }
 0x53a   :  { %v465_v38 = vmul.f32 %v1246_v33, %v464_v36  ;;  %1251 = vrcp.f32 %v481_v48  ;;  %v493_v55 = vand.u32 2147483648, %v481_v48  ;;  %vm487_vm0 = vweird.f32 %v481_v48 }
 0x53b   :  { %v491_v57 = vand.u32 2147483647, %v481_v48 }
 0x53c   :  { %v466_v40 = vadd.f32 %v1246_v33, %v465_v38  ;;  %v494_v59 = vor.u32 1.1754944e-38, %v493_v55 }
 0x53d   :  { %vm492_vm2 = vcmp.eq.f32.partialorder %v491_v57, 8.507059e+37 }
 0x53e   :  { %v470_v42 = vsel %vm469_vm13, %v1246_v33, %v466_v40 }
 0x53f   :  { %v475_v44 = vsel %vm472_vm14, %v474_v24, %v470_v42 }
 0x540   :  { %v501_v45 = vmul.f32 %v1248_v43, %v475_v44  ;;  %v500_v46 = vmul.f32 %v498_v41, %v475_v44  ;;  %v1252_v49 = vpop.eup %1251 }
 0x541   :  { %v483_v50 = vmul.f32 %v1252_v49, %v481_v48  ;;  %vm488_vm15 = vweird.f32 %v1252_v49 }
 0x542   :  { %503 = vrot.lane.b32.xlu0 %v501_v45, %s1346_s4  ;;  %vm489_vm1 = vmor %vm487_vm0, %vm488_vm15 }
 0x543   :  { %v484_v51 = vsub.f32 1.0, %v483_v50 }
 0x545   :  { %v485_v52 = vmul.f32 %v1252_v49, %v484_v51 }
 0x547   :  { %v486_v56 = vadd.f32 %v1252_v49, %v485_v52 }
 0x549   :  { %v490_v58 = vsel %vm489_vm1, %v1252_v49, %v486_v56 }
 0x54a   :  { %v495_v61 = vsel %vm492_vm2, %v494_v59, %v490_v58 }
 0x5b4   :  { %v504_v53 = vpop.permute.xlu0 %503 }
 0x5b5   :  { %v1662_v54 = vadd.f32 %v504_v53, %v500_v46 }
 0x5b7   :  { %1253 = vtanh.f32 %v1662_v54 }
 0x5bd   :  { %v1254_v60 = vpop.eup %1253 }
 0x5be   :  { %v1665_v62 = vmul.f32 %v1254_v60, %v495_v61 }
 0x5c0   :  { %v510_v8 = vrot.slane %v1665_v62, 6 }
 0x5c2   :  { %511 = vrot.lane.b32.xlu1 %v510_v8, %s1346_s4 }
 0x634   :  { %v512_v16 = vpop.permute.xlu1 %511 }
 0x635   :  { %1179 = vmatmul.msk.f32.vlgmr.msra.gmra.mxu2 %vm101_vm9, %v512_v16  ;;  %1180 = vmatmul.msk.f32.vlgmr.msra.gmra.mxu3 %vm101_vm9, %v512_v16 }
 0x636   :  { %936 = vmatpush.msra.mxu2 %v1373_v0  ;;  %956 = vmatpush.msra.mxu3 %v1384_v2 }
 0x638   :  { %937 = vmatpush.msra.mxu2 %v1378_v1  ;;  %957 = vmatpush.msra.mxu3 %v1395_v4 }
 0x63a   :  { %938 = vmatpush.msra.mxu2 %v1389_v3  ;;  %958 = vmatpush.msra.mxu3 %v1401_v5 }
 0x63c   :  { %939 = vmatpush.msra.mxu2 %v1406_v6  ;;  %959 = vmatpush.msra.mxu3 %v1419_v9 }
 0x63e   :  { %940 = vmatpush.msra.mxu2 %v1424_v10  ;;  %960 = vmatpush.msra.mxu3 %v1437_v13 }
 0x640   :  { %941 = vmatpush.msra.mxu2 %v1445_v15  ;;  %961 = vmatpush.msra.mxu3 %v1455_v17 }
 0x642   :  { %942 = vmatpush.msra.mxu2 %v1460_v18  ;;  %962 = vmatpush.msra.mxu3 %v1471_v20 }
 0x644   :  { %943 = vmatpush.msra.mxu2 %v1476_v21  ;;  %963 = vmatpush.msra.mxu3 %v1484_v22  ;;  %v597_v22 = vrot.slane %v1662_v54, 6 }
 0x6b8   :  { %v532_v0 = vpop.f32.mrf.mxu2  ;;  %v552_v5 = vpop.f32.mrf.mxu3 }
 0x6b9   :  { %v555_v1 = vadd.f32 %v532_v0, %v1592_v11  ;;  %v556_v9 = vadd.f32 %v552_v5, %v1596_v14 }
 0x6bb   :  { %v1181_v2 = vmul.f32 -1.442695, %v555_v1  ;;  %v1182_v29 = vmul.f32 -1.442695, %v556_v9 }
 0x6bd   :  { %1255 = vpow2.f32 %v1181_v2 }
 0x6c3   :  { %v1256_v3 = vpop.eup %1255 }
 0x6c4   :  { %v560_v4 = vadd.f32 1.0, %v1256_v3 }
 0x6c6   :  { %1257 = vrcp.f32 %v560_v4  ;;  %v572_v15 = vand.u32 2147483648, %v560_v4  ;;  %v570_v18 = vand.u32 2147483647, %v560_v4  ;;  %vm566_vm4 = vweird.f32 %v560_v4 }
 0x6c7   :  { %1259 = vtanh.f32 %v556_v9 }
 0x6c8   :  { %v573_v21 = vor.u32 1.1754944e-38, %v572_v15  ;;  %vm571_vm6 = vcmp.eq.f32.partialorder %v570_v18, 8.507059e+37  ;;  %1261 = vpow2.f32 %v1182_v29 }
 0x6cc   :  { %v1258_v6 = vpop.eup %1257 }
 0x6cd   :  { %v562_v10 = vmul.f32 %v1258_v6, %v560_v4  ;;  %vm567_vm3 = vweird.f32 %v1258_v6  ;;  %v1260_v23 = vpop.eup %1259 }
 0x6ce   :  { %vm568_vm5 = vmor %vm566_vm4, %vm567_vm3  ;;  %v1262_v31 = vpop.eup %1261 }
 0x6cf   :  { %v563_v13 = vsub.f32 1.0, %v562_v10  ;;  %v580_v32 = vadd.f32 1.0, %v1262_v31 }
 0x6d1   :  { %v564_v17 = vmul.f32 %v1258_v6, %v563_v13  ;;  %1263 = vrcp.f32 %v580_v32  ;;  %v592_v40 = vand.u32 2147483648, %v580_v32  ;;  %vm586_vm8 = vweird.f32 %v580_v32 }
 0x6d2   :  { %v590_v24 = vand.u32 2147483647, %v580_v32 }
 0x6d3   :  { %v565_v20 = vadd.f32 %v1258_v6, %v564_v17  ;;  %v593_v42 = vor.u32 1.1754944e-38, %v592_v40 }
 0x6d4   :  { %vm591_vm11 = vcmp.eq.f32.partialorder %v590_v24, 8.507059e+37 }
 0x6d5   :  { %v569_v19 = vsel %vm568_vm5, %v1258_v6, %v565_v20 }
 0x6d6   :  { %v574_v26 = vsel %vm571_vm6, %v573_v21, %v569_v19 }
 0x6d7   :  { %v600_v27 = vmul.f32 %v1260_v23, %v574_v26  ;;  %v599_v28 = vmul.f32 %v597_v22, %v574_v26  ;;  %v1264_v33 = vpop.eup %1263 }
 0x6d8   :  { %v582_v34 = vmul.f32 %v1264_v33, %v580_v32  ;;  %vm587_vm7 = vweird.f32 %v1264_v33 }
 0x6d9   :  { %602 = vrot.lane.b32.xlu2 %v600_v27, %s1346_s4  ;;  %vm588_vm10 = vmor %vm586_vm8, %vm587_vm7 }
 0x6da   :  { %v583_v35 = vsub.f32 1.0, %v582_v34 }
 0x6dc   :  { %v584_v36 = vmul.f32 %v1264_v33, %v583_v35 }
 0x6de   :  { %v585_v39 = vadd.f32 %v1264_v33, %v584_v36 }
 0x6e0   :  { %v589_v41 = vsel %vm588_vm10, %v1264_v33, %v585_v39 }
 0x6e1   :  { %v594_v44 = vsel %vm591_vm11, %v593_v42, %v589_v41 }
 0x733   :  { %v603_v37 = vpop.permute.xlu2 %602 }
 0x734   :  { %v605_v38 = vadd.f32 %v603_v37, %v599_v28 }
 0x736   :  { %1265 = vtanh.f32 %v605_v38  ;;  %v701_v16 = vrot.slane %v605_v38, 6 }
 0x73c   :  { %v1266_v43 = vpop.eup %1265 }
 0x73d   :  { %v1691_v45 = vmul.f32 %v1266_v43, %v594_v44 }
 0x73f   :  { %609 = vrot.lane.b32.xlu0 %v1691_v45, %s1346_s4 }
 0x7b1   :  { %v610_v46 = vpop.permute.xlu0 %609 }
 0x7b2   :  { %1183 = vmatmul.msk.f32.vlgmr.msrb.gmra.mxu0 %vm101_vm9, %v610_v46  ;;  %1184 = vmatmul.msk.f32.vlgmr.msrb.gmra.mxu1 %vm101_vm9, %v610_v46 }
 0x82f   :  { %v630_v30 = vpop.f32.mrf.mxu0  ;;  %v650_v52 = vpop.f32.mrf.mxu1 }
 0x830   :  { %v655_v47 = vrot.slane %v630_v30, 6  ;;  %v656_v53 = vrot.slane %v650_v52, 6 }
 0x832   :  { %v659_v48 = vadd.f32 %v655_v47, %v1592_v11  ;;  %v660_v56 = vadd.f32 %v656_v53, %v1596_v14 }
 0x834   :  { %v1185_v49 = vmul.f32 -1.442695, %v659_v48  ;;  %v1186_v5 = vmul.f32 -1.442695, %v660_v56 }
 0x836   :  { %1267 = vpow2.f32 %v1185_v49 }
 0x83c   :  { %v1268_v50 = vpop.eup %1267 }
 0x83d   :  { %v664_v51 = vadd.f32 1.0, %v1268_v50 }
 0x83f   :  { %1269 = vrcp.f32 %v664_v51  ;;  %v676_v58 = vand.u32 2147483648, %v664_v51  ;;  %v674_v60 = vand.u32 2147483647, %v664_v51  ;;  %vm670_vm13 = vweird.f32 %v664_v51 }
 0x840   :  { %1271 = vtanh.f32 %v660_v56 }
 0x841   :  { %v677_v8 = vor.u32 1.1754944e-38, %v676_v58  ;;  %vm675_vm15 = vcmp.eq.f32.partialorder %v674_v60, 8.507059e+37  ;;  %1273 = vpow2.f32 %v1186_v5 }
 0x845   :  { %v1270_v54 = vpop.eup %1269 }
 0x846   :  { %v666_v55 = vmul.f32 %v1270_v54, %v664_v51  ;;  %vm671_vm12 = vweird.f32 %v1270_v54  ;;  %v1272_v1 = vpop.eup %1271 }
 0x847   :  { %vm672_vm14 = vmor %vm670_vm13, %vm671_vm12  ;;  %v1274_v6 = vpop.eup %1273  ;;  %vm1072_vm13 = vcmask 1041409  }
 0x848   :  { %v667_v57 = vsub.f32 1.0, %v666_v55  ;;  %v684_v9 = vadd.f32 1.0, %v1274_v6 }
 0x84a   :  { %v668_v59 = vmul.f32 %v1270_v54, %v667_v57  ;;  %1275 = vrcp.f32 %v684_v9  ;;  %v696_v22 = vand.u32 2147483648, %v684_v9  ;;  %vm690_vm1 = vweird.f32 %v684_v9 }
 0x84b   :  { %v694_v19 = vand.u32 2147483647, %v684_v9 }
 0x84c   :  { %v669_v61 = vadd.f32 %v1270_v54, %v668_v59  ;;  %v697_v26 = vor.u32 1.1754944e-38, %v696_v22 }
 0x84d   :  { %vm695_vm3 = vcmp.eq.f32.partialorder %v694_v19, 8.507059e+37 }
 0x84e   :  { %v673_v0 = vsel %vm672_vm14, %v1270_v54, %v669_v61  ;;  %vm1075_vm14 = vcmask 1042434  }
 0x84f   :  { %v678_v2 = vsel %vm675_vm15, %v677_v8, %v673_v0  ;;  %vm1077_vm15 = vcmask 1043459  }
 0x850   :  { %v704_v3 = vmul.f32 %v1272_v1, %v678_v2  ;;  %v703_v4 = vmul.f32 %v701_v16, %v678_v2  ;;  %v1276_v10 = vpop.eup %1275 }
 0x851   :  { %v686_v13 = vmul.f32 %v1276_v10, %v684_v9  ;;  %vm691_vm0 = vweird.f32 %v1276_v10 }
 0x852   :  { %706 = vrot.lane.b32.xlu1 %v704_v3, %s1346_s4  ;;  %vm692_vm2 = vmor %vm690_vm1, %vm691_vm0  ;;  %v1021_v3 = vrot.slane %v1636_v7, 2  ;;  %vm1080_vm0 = vcmask 1044484   ;;  %vm1083_vm1 = vcmask 1045509   ;;  %v1063_v7 = vld [vmem:[%s1799_s1 + $0xd0] sm:$0xff] }
 0x853   :  { %v687_v15 = vsub.f32 1.0, %v686_v13 }
 0x854   :  { %v1071_v9 = vrot.slane %v1021_v3, 2 }
 0x855   :  { %v688_v17 = vmul.f32 %v1276_v10, %v687_v15 }
 0x857   :  { %v689_v21 = vadd.f32 %v1276_v10, %v688_v17  ;;  %v1070_v17 = vrot.slane %v1607_v63, 3 }
 0x859   :  { %v693_v23 = vsel %vm692_vm2, %v1276_v10, %v689_v21 }
 0x85a   :  { %v698_v28 = vsel %vm695_vm3, %v697_v26, %v693_v23  ;;  %v1073_v23 = vsel %vm1072_vm13, %v1071_v9, %v1070_v17 }
 0x8c4   :  { %v707_v18 = vpop.permute.xlu1 %706 }
 0x8c5   :  { %v709_v20 = vadd.f32 %v707_v18, %v703_v4  ;;  %v1022_v4 = vrot.slane %v1665_v62, 4  ;;  %v1199_v62 = vld [vmem:[%s1799_s1 + $0xf0] ss:$8 sm:$0x3] }
 0x8c7   :  { %1277 = vtanh.f32 %v709_v20  ;;  %v806_v49 = vrot.slane %v709_v20, 6  ;;  %v1074_v13 = vrot.slane %v1022_v4, 1  ;;  %v1023_v20 = vrot.slane %v1691_v45, 6 }
 0x8c9   :  { %v1076_v26 = vsel %vm1075_vm14, %v1074_v13, %v1073_v23 }
 0x8cd   :  { %v1278_v27 = vpop.eup %1277 }
 0x8ce   :  { %v1700_v29 = vmul.f32 %v1278_v27, %v698_v28  ;;  %v1078_v28 = vsel %vm1077_vm15, %v1023_v20, %v1076_v26 }
 0x8d0   :  { %v713_v31 = vrot.slane %v1700_v29, 2  ;;  %v1079_v21 = vrot.slane %v1700_v29, 7 }
 0x8d2   :  { %714 = vrot.lane.b32.xlu2 %v713_v31, %s1346_s4  ;;  %v1081_v31 = vsel %vm1080_vm0, %v1079_v21, %v1078_v28 }
 0x92c   :  { %v715_v32 = vpop.permute.xlu2 %714 }
 0x92d   :  { %1187 = vmatmul.msk.f32.vlgmr.msrb.gmra.mxu2 %vm101_vm9, %v715_v32  ;;  %1188 = vmatmul.msk.f32.vlgmr.msrb.gmra.mxu3 %vm101_vm9, %v715_v32 }
 0x9b0   :  { %v735_v33 = vpop.f32.mrf.mxu2  ;;  %v755_v39 = vpop.f32.mrf.mxu3 }
 0x9b1   :  { %v760_v34 = vrot.slane %v735_v33, 4  ;;  %v761_v40 = vrot.slane %v755_v39, 4 }
 0x9b3   :  { %v764_v35 = vadd.f32 %v760_v34, %v1592_v11  ;;  %v765_v41 = vadd.f32 %v761_v40, %v1596_v14 }
 0x9b5   :  { %v1189_v36 = vmul.f32 -1.442695, %v764_v35  ;;  %v1190_v56 = vmul.f32 -1.442695, %v765_v41 }
 0x9b7   :  { %1279 = vpow2.f32 %v1189_v36 }
 0x9bd   :  { %v1280_v37 = vpop.eup %1279 }
 0x9be   :  { %v769_v38 = vadd.f32 1.0, %v1280_v37 }
 0x9c0   :  { %1281 = vrcp.f32 %v769_v38  ;;  %v781_v44 = vand.u32 2147483648, %v769_v38  ;;  %v779_v30 = vand.u32 2147483647, %v769_v38  ;;  %vm775_vm5 = vweird.f32 %v769_v38 }
 0x9c1   :  { %1283 = vtanh.f32 %v765_v41 }
 0x9c2   :  { %v782_v48 = vor.u32 1.1754944e-38, %v781_v44  ;;  %vm780_vm7 = vcmp.eq.f32.partialorder %v779_v30, 8.507059e+37  ;;  %1285 = vpow2.f32 %v1190_v56 }
 0x9c6   :  { %v1282_v24 = vpop.eup %1281 }
 0x9c7   :  { %v771_v42 = vmul.f32 %v1282_v24, %v769_v38  ;;  %vm776_vm4 = vweird.f32 %v1282_v24  ;;  %v1284_v51 = vpop.eup %1283 }
 0x9c8   :  { %vm777_vm6 = vmor %vm775_vm5, %vm776_vm4  ;;  %v1286_v55 = vpop.eup %1285 }
 0x9c9   :  { %v772_v43 = vsub.f32 1.0, %v771_v42  ;;  %v789_v57 = vadd.f32 1.0, %v1286_v55 }
 0x9cb   :  { %v773_v46 = vmul.f32 %v1282_v24, %v772_v43  ;;  %1287 = vrcp.f32 %v789_v57  ;;  %v801_v1 = vand.u32 2147483648, %v789_v57  ;;  %vm795_vm10 = vweird.f32 %v789_v57 }
 0x9cc   :  { %v799_v2 = vand.u32 2147483647, %v789_v57 }
 0x9cd   :  { %v774_v47 = vadd.f32 %v1282_v24, %v773_v46  ;;  %v802_v6 = vor.u32 1.1754944e-38, %v801_v1 }
 0x9ce   :  { %vm800_vm12 = vcmp.eq.f32.partialorder %v799_v2, 8.507059e+37 }
 0x9cf   :  { %v778_v50 = vsel %vm777_vm6, %v1282_v24, %v774_v47 }
 0x9d0   :  { %v783_v52 = vsel %vm780_vm7, %v782_v48, %v778_v50 }
 0x9d1   :  { %v809_v53 = vmul.f32 %v1284_v51, %v783_v52  ;;  %v808_v54 = vmul.f32 %v806_v49, %v783_v52  ;;  %v1288_v58 = vpop.eup %1287 }
 0x9d2   :  { %v791_v59 = vmul.f32 %v1288_v58, %v789_v57  ;;  %vm796_vm8 = vweird.f32 %v1288_v58 }
 0x9d3   :  { %811 = vrot.lane.b32.xlu0 %v809_v53, %s1346_s4  ;;  %vm797_vm11 = vmor %vm795_vm10, %vm796_vm8 }
 0x9d4   :  { %v792_v60 = vsub.f32 1.0, %v791_v59 }
 0x9d6   :  { %v793_v61 = vmul.f32 %v1288_v58, %v792_v60 }
 0x9d8   :  { %v794_v0 = vadd.f32 %v1288_v58, %v793_v61 }
 0x9da   :  { %v798_v5 = vsel %vm797_vm11, %v1288_v58, %v794_v0  ;;  %vm1086_vm11 = vcmask 1046534  }
 0x9db   :  { %v803_v15 = vsel %vm800_vm12, %v802_v6, %v798_v5  ;;  %vm1052_vm12 = vcmask 257026  }
 0xa45   :  { %v812_v8 = vpop.permute.xlu0 %811 }
 0xa46   :  { %v1709_v16 = vadd.f32 %v812_v8, %v808_v54 }
 0xa48   :  { %1289 = vtanh.f32 %v1709_v16  ;;  %v911_v49 = vrot.slane %v1709_v16, 6 }
 0xa4e   :  { %v1290_v10 = vpop.eup %1289 }
 0xa4f   :  { %v1719_v18 = vmul.f32 %v1290_v10, %v803_v15 }
 0xa51   :  { %v818_v22 = vrot.slane %v1719_v18, 4  ;;  %v1024_v19 = vrot.slane %v1719_v18, 2 }
 0xa53   :  { %v1082_v27 = vrot.slane %v1024_v19, 6  ;;  %819 = vrot.lane.b32.xlu1 %v818_v22, %s1346_s4 }
 0xa55   :  { %v1730_v32 = vsel %vm1083_vm1, %v1082_v27, %v1081_v31 }
 0xac5   :  { %v820_v33 = vpop.permute.xlu1 %819 }
 0xac6   :  { %1191 = vmatmul.msk.f32.vlgmr.msra.gmra.mxu0 %vm101_vm9, %v820_v33  ;;  %1192 = vmatmul.msk.f32.vlgmr.msra.gmra.mxu1 %vm101_vm9, %v820_v33 }
 0xb43   :  { %v840_v34 = vpop.f32.mrf.mxu0  ;;  %v860_v40 = vpop.f32.mrf.mxu1 }
 0xb44   :  { %v865_v35 = vrot.slane %v840_v34, 2  ;;  %v866_v24 = vrot.slane %v860_v40, 2 }
 0xb46   :  { %v869_v36 = vadd.f32 %v865_v35, %v1592_v11  ;;  %v870_v42 = vadd.f32 %v866_v24, %v1596_v14 }
 0xb48   :  { %v1193_v37 = vmul.f32 -1.442695, %v869_v36  ;;  %v1194_v14 = vmul.f32 -1.442695, %v870_v42 }
 0xb4a   :  { %1291 = vpow2.f32 %v1193_v37 }
 0xb50   :  { %v1292_v38 = vpop.eup %1291 }
 0xb51   :  { %v874_v39 = vadd.f32 1.0, %v1292_v38 }
 0xb53   :  { %1293 = vrcp.f32 %v874_v39  ;;  %v886_v46 = vand.u32 2147483648, %v874_v39  ;;  %v884_v47 = vand.u32 2147483647, %v874_v39  ;;  %vm880_vm3 = vweird.f32 %v874_v39 }
 0xb54   :  { %1295 = vtanh.f32 %v870_v42 }
 0xb55   :  { %v887_v11 = vor.u32 1.1754944e-38, %v886_v46  ;;  %vm885_vm5 = vcmp.eq.f32.partialorder %v884_v47, 8.507059e+37  ;;  %1297 = vpow2.f32 %v1194_v14 }
 0xb59   :  { %v1294_v41 = vpop.eup %1293 }
 0xb5a   :  { %v876_v43 = vmul.f32 %v1294_v41, %v874_v39  ;;  %vm881_vm2 = vweird.f32 %v1294_v41  ;;  %v1296_v51 = vpop.eup %1295 }
 0xb5b   :  { %vm882_vm4 = vmor %vm880_vm3, %vm881_vm2  ;;  %v1298_v56 = vpop.eup %1297 }
 0xb5c   :  { %v877_v44 = vsub.f32 1.0, %v876_v43  ;;  %v894_v55 = vadd.f32 1.0, %v1298_v56  ;;  %v1061_v56 = vld [vmem:[%s1799_s1 + $0xb0] sm:$0xff] }
 0xb5e   :  { %v878_v30 = vmul.f32 %v1294_v41, %v877_v44  ;;  %1299 = vrcp.f32 %v894_v55  ;;  %v906_v0 = vand.u32 2147483648, %v894_v55  ;;  %vm900_vm7 = vweird.f32 %v894_v55 }
 0xb5f   :  { %v904_v1 = vand.u32 2147483647, %v894_v55 }
 0xb60   :  { %v879_v48 = vadd.f32 %v1294_v41, %v878_v30  ;;  %v907_v5 = vor.u32 1.1754944e-38, %v906_v0 }
 0xb61   :  { %vm905_vm10 = vcmp.eq.f32.partialorder %v904_v1, 8.507059e+37 }
 0xb62   :  { %v883_v50 = vsel %vm882_vm4, %v1294_v41, %v879_v48  ;;  %vm1089_vm4 = vcmask 1047559  }
 0xb63   :  { %v888_v52 = vsel %vm885_vm5, %v887_v11, %v883_v50  ;;  %vm1093_vm5 = vcmask 261120  }
 0xb64   :  { %v914_v53 = vmul.f32 %v1296_v51, %v888_v52  ;;  %v913_v54 = vmul.f32 %v911_v49, %v888_v52  ;;  %v1300_v57 = vpop.eup %1299 }
 0xb65   :  { %v896_v58 = vmul.f32 %v1300_v57, %v894_v55  ;;  %vm901_vm6 = vweird.f32 %v1300_v57 }
 0xb66   :  { %916 = vrot.lane.b32.xlu2 %v914_v53, %s1346_s4  ;;  %vm902_vm8 = vmor %vm900_vm7, %vm901_vm6  ;;  %v1064_v53 = vld [vmem:[%s1799_s1 + $0xe0] sm:$0xff] }
 0xb67   :  { %v897_v59 = vsub.f32 1.0, %v896_v58  ;;  %1108 = vmatpush.msrb.mxu0 %v1064_v53 }
 0xb69   :  { %v898_v60 = vmul.f32 %v1300_v57, %v897_v59  ;;  %1109 = vmatpush.msrb.mxu0 %v1063_v7 }
 0xb6b   :  { %v899_v16 = vadd.f32 %v1300_v57, %v898_v60 }
 0xb6d   :  { %v903_v2 = vsel %vm902_vm8, %v1300_v57, %v899_v16 }
 0xb6e   :  { %v908_v9 = vsel %vm905_vm10, %v907_v5, %v903_v2  ;;  %vm1135_vm10 = vcmask 7168  }
 0xbc0   :  { %v917_v61 = vpop.permute.xlu2 %916 }
 0xbc1   :  { %v919_v8 = vadd.f32 %v917_v61, %v913_v54  ;;  %v1062_v54 = vld [vmem:[%s1799_s1 + $0xc0] sm:$0xff] }
 0xbc2   :  { %1110 = vmatpush.msrb.mxu0 %v1062_v54 }
 0xbc3   :  { %1301 = vtanh.f32 %v919_v8  ;;  %v1010_v24 = vrot.slane %v919_v8, 6 }
 0xbc4   :  { %1111 = vmatpush.msrb.mxu0 %v1061_v56 }
 0xbc9   :  { %v1302_v6 = vpop.eup %1301 }
 0xbca   :  { %v921_v10 = vmul.f32 %v1302_v6, %v908_v9 }
 0xbcc   :  { %v923_v13 = vrot.slane %v921_v10, 6  ;;  %v1025_v15 = vrot.slane %v921_v10, 4 }
 0xbce   :  { %924 = vrot.lane.b32.xlu0 %v923_v13, %s1346_s4  ;;  %v1085_v17 = vrot.slane %v1025_v15, 5 }
 0xbd0   :  { %v1740_v21 = vsel %vm1086_vm11, %v1085_v17, %v1730_v32 }
 0xbd6   :  { %1028 = vrot.lane.b32.xlu0 %v1607_v63, %s1347_s0 }
 0xbde   :  { %1034 = vrot.lane.b32.xlu0 %v1023_v20, %s1347_s0 }
 0xbe6   :  { %1040 = vrot.lane.b32.xlu0 %v1025_v15, %s1347_s0 }
 0xc40   :  { %v925_v22 = vpop.permute.xlu0 %924 }
 0xc41   :  { %1195 = vmatmul.msk.f32.vlgmr.msra.gmra.mxu2 %vm101_vm9, %v925_v22  ;;  %1196 = vmatmul.msk.f32.vlgmr.msra.gmra.mxu3 %vm101_vm9, %v925_v22 }
 0xc48   :  { %v1029_v23 = vpop.permute.xlu0 %1028 }
 0xc49   :  { %1053 = vst.msk [vmem:[#allocation2 - $0x2] sm:$0xc] %vm1052_vm12, %v1029_v23 }
 0xc50   :  { %v1035_v26 = vpop.permute.xlu0 %1034 }
 0xc51   :  { %1056 = vst.msk [vmem:[#allocation2 + $0x4] sm:$0xc] %vm1052_vm12, %v1035_v26 }
 0xc58   :  { %v1041_v27 = vpop.permute.xlu0 %1040 }
 0xc59   :  { %1059 = vst.msk [vmem:[#allocation2 + $0xa] sm:$0xc] %vm1052_vm12, %v1041_v27 }
 0xcc4   :  { %v945_v63 = vpop.f32.mrf.mxu2  ;;  %v965_v32 = vpop.f32.mrf.mxu3 }
 0xcc5   :  { %v968_v45 = vadd.f32 %v945_v63, %v1594_v12  ;;  %v969_v34 = vadd.f32 %v965_v32, %v1599_v25 }
 0xcc7   :  { %v1197_v20 = vmul.f32 -1.442695, %v968_v45  ;;  %v1198_v25 = vmul.f32 -1.442695, %v969_v34 }
 0xcc9   :  { %1303 = vpow2.f32 %v1197_v20 }
 0xccf   :  { %v1304_v28 = vpop.eup %1303 }
 0xcd0   :  { %v973_v31 = vadd.f32 1.0, %v1304_v28 }
 0xcd2   :  { %1305 = vrcp.f32 %v973_v31  ;;  %v985_v37 = vand.u32 2147483648, %v973_v31  ;;  %v983_v39 = vand.u32 2147483647, %v973_v31  ;;  %vm979_vm13 = vweird.f32 %v973_v31 }
 0xcd3   :  { %1307 = vtanh.f32 %v969_v34 }
 0xcd4   :  { %v986_v12 = vor.u32 1.1754944e-38, %v985_v37  ;;  %vm984_vm15 = vcmp.eq.f32.partialorder %v983_v39, 8.507059e+37  ;;  %1309 = vpow2.f32 %v1198_v25 }
 0xcd8   :  { %v1306_v33 = vpop.eup %1305 }
 0xcd9   :  { %v975_v35 = vmul.f32 %v1306_v33, %v973_v31  ;;  %vm980_vm9 = vweird.f32 %v1306_v33  ;;  %v1308_v42 = vpop.eup %1307 }
 0xcda   :  { %vm981_vm14 = vmor %vm979_vm13, %vm980_vm9  ;;  %v1310_v30 = vpop.eup %1309 }
 0xcdb   :  { %v976_v36 = vsub.f32 1.0, %v975_v35  ;;  %v993_v47 = vadd.f32 1.0, %v1310_v30 }
 0xcdd   :  { %v977_v38 = vmul.f32 %v1306_v33, %v976_v36  ;;  %1311 = vrcp.f32 %v993_v47  ;;  %vm999_vm1 = vweird.f32 %v993_v47  ;;  %v1003_v14 = vand.u32 2147483647, %v993_v47 }
 0xcdf   :  { %v978_v40 = vadd.f32 %v1306_v33, %v977_v38  ;;  %vm1004_vm3 = vcmp.eq.f32.partialorder %v1003_v14, 8.507059e+37 }
 0xce1   :  { %v982_v41 = vsel %vm981_vm14, %v1306_v33, %v978_v40 }
 0xce2   :  { %v987_v43 = vsel %vm984_vm15, %v986_v12, %v982_v41 }
 0xce3   :  { %v1013_v44 = vmul.f32 %v1308_v42, %v987_v43  ;;  %v1012_v46 = vmul.f32 %v1010_v24, %v987_v43  ;;  %v1312_v48 = vpop.eup %1311 }
 0xce4   :  { %v995_v11 = vmul.f32 %v1312_v48, %v993_v47  ;;  %vm1000_vm0 = vweird.f32 %v1312_v48 }
 0xce5   :  { %1015 = vrot.lane.b32.xlu1 %v1013_v44, %s1346_s4  ;;  %vm1001_vm2 = vmor %vm999_vm1, %vm1000_vm0 }
 0xce6   :  { %v996_v49 = vsub.f32 1.0, %v995_v11 }
 0xce8   :  { %v997_v50 = vmul.f32 %v1312_v48, %v996_v49 }
 0xced   :  { %1030 = vrot.lane.b32.xlu1 %v1021_v3, %s1347_s0  ;;  %v1005_v3 = vand.u32 2147483648, %v993_v47 }
 0xcef   :  { %v1006_v57 = vor.u32 1.1754944e-38, %v1005_v3 }
 0xcf5   :  { %1036 = vrot.lane.b32.xlu1 %v1700_v29, %s1347_s0  ;;  %v998_v29 = vadd.f32 %v1312_v48, %v997_v50 }
 0xcf7   :  { %v1002_v55 = vsel %vm1001_vm2, %v1312_v48, %v998_v29 }
 0xcf8   :  { %v1007_v60 = vsel %vm1004_vm3, %v1006_v57, %v1002_v55 }
 0xd57   :  { %v1016_v51 = vpop.permute.xlu1 %1015 }
 0xd58   :  { %v1018_v52 = vadd.f32 %v1016_v51, %v1012_v46 }
 0xd5a   :  { %1313 = vtanh.f32 %v1018_v52 }
 0xd5f   :  { %v1031_v58 = vpop.permute.xlu1 %1030 }
 0xd60   :  { %v1314_v59 = vpop.eup %1313  ;;  %1054 = vst.msk [vmem:[#allocation2] sm:$0xc] %vm1052_vm12, %v1031_v58 }
 0xd61   :  { %v1020_v61 = vmul.f32 %v1314_v59, %v1007_v60 }
 0xd63   :  { %v1027_v8 = vrot.slane %v1020_v61, 6 }
 0xd65   :  { %1042 = vrot.lane.b32.xlu1 %v1027_v8, %s1347_s0  ;;  %v1088_v16 = vrot.slane %v1027_v8, 4 }
 0xd67   :  { %v1037_v0 = vpop.permute.xlu1 %1036  ;;  %v1090_v1 = vsel %vm1089_vm4, %v1088_v16, %v1740_v21 }
 0xd68   :  { %1057 = vst.msk [vmem:[#allocation2 + $0x6] sm:$0xc] %vm1052_vm12, %v1037_v0  ;;  %1091 = vrot.lane.b32.xlu2 %v1090_v1, %s1347_s0 }
 0xd70   :  { %1032 = vrot.lane.b32.xlu2 %v1022_v4, %s1347_s0  ;;  %v1068_v4 = vperm.slane %v1199_v62, 0 }
 0xd78   :  { %1038 = vrot.lane.b32.xlu2 %v1024_v19, %s1347_s0 }
 0xdc2   :  { %v1092_v2 = vpop.permute.xlu2 %1091 }
 0xdc3   :  { %1200 = vmatmul.msk.f32.vlgmr.msrb.gmra.mxu0 %vm1093_vm5, %v1092_v2 }
 0xdca   :  { %v1033_v5 = vpop.permute.xlu2 %1032 }
 0xdcb   :  { %1055 = vst.msk [vmem:[#allocation2 + $0x2] sm:$0xc] %vm1052_vm12, %v1033_v5 }
 0xdd2   :  { %v1039_v6 = vpop.permute.xlu2 %1038 }
 0xdd3   :  { %1058 = vst.msk [vmem:[#allocation2 + $0x8] sm:$0xc] %vm1052_vm12, %v1039_v6 }
 0xdd7   :  { %v1043_v9 = vpop.permute.xlu1 %1042 }
 0xdd8   :  { %1060 = vst.msk [vmem:[#allocation2 + $0xc] sm:$0xc] %vm1052_vm12, %v1043_v9 }
 0xdd9   :  { %1149 = dma.vmem_to_hbm [thread:$0]  %s1142_s18, 256, %s1144_s21, [#allocation3], %s1347_s0, %s1347_s0, %s1349_s22  }
 0xe40   :  { %v1113_v18 = vpop.f32.mrf.mxu0 }
 0xe41   :  { %v1114_v19 = vadd.f32 %v1113_v18, %v1068_v4 }
 0xe43   :  { %v1201_v10 = vmul.f32 -1.442695, %v1114_v19 }
 0xe45   :  { %1315 = vpow2.f32 %v1201_v10 }
 0xe4b   :  { %v1316_v13 = vpop.eup %1315 }
 0xe4c   :  { %v1119_v15 = vadd.f32 1.0, %v1316_v13 }
 0xe4e   :  { %1317 = vrcp.f32 %v1119_v15  ;;  %v1131_v23 = vand.u32 2147483648, %v1119_v15  ;;  %v1129_v27 = vand.u32 2147483647, %v1119_v15  ;;  %vm1125_vm7 = vweird.f32 %v1119_v15 }
 0xe50   :  { %v1132_v45 = vor.u32 1.1754944e-38, %v1131_v23  ;;  %vm1130_vm11 = vcmp.eq.f32.partialorder %v1129_v27, 8.507059e+37 }
 0xe54   :  { %v1318_v17 = vpop.eup %1317 }
 0xe55   :  { %v1121_v21 = vmul.f32 %v1318_v17, %v1119_v15  ;;  %vm1126_vm6 = vweird.f32 %v1318_v17 }
 0xe56   :  { %vm1127_vm8 = vmor %vm1125_vm7, %vm1126_vm6 }
 0xe57   :  { %v1122_v22 = vsub.f32 1.0, %v1121_v21 }
 0xe59   :  { %v1123_v26 = vmul.f32 %v1318_v17, %v1122_v22 }
 0xe5b   :  { %v1124_v63 = vadd.f32 %v1318_v17, %v1123_v26 }
 0xe5d   :  { %v1128_v20 = vsel %vm1127_vm8, %v1318_v17, %v1124_v63 }
 0xe5e   :  { %v1133_v28 = vsel %vm1130_vm11, %v1132_v45, %v1128_v20 }
 0xe5f   :  { %1136 = vst.msk [vmem:[%s1801_s3] sm:$0xff] %vm1135_vm10, %v1133_v28 }
 0xe60   :  { %1343 = dma.done.wait [#allocation3], 256  }
 0xe61   :  { %1344 = vsyncadd [#allocation3], 4294967040 }
 0xe62   :  { %1158 = vsyncpa [#allocation3], 1 }

</bundles_post_ra>
